<compile_context>
chip_gen: v6e
topology: v6e:2x2x1
jax: 0.10.0
libtpu: 0.0.40
codegen_flags: <defaults>
</compile_context>

<pallas_src>
import jax
import jax.numpy as jnp
from jax.experimental import pallas as pl
from jax.experimental.pallas import tpu as pltpu

IN_FEATURES = 784
HIDDEN = 32
OUT_FEATURES = 10


def mlp_kernel(x_ref, w1_ref, b1_ref, w2_ref, b2_ref, out_ref):
    hp = jax.lax.Precision.HIGHEST  # free: kernel is HBM-bound, MXU has slack
    # hidden = relu(x @ w1 + b1)   (f32 accumulation on the MXU)
    h = jnp.dot(x_ref[...], w1_ref[...],
                preferred_element_type=jnp.float32, precision=hp)
    h = jnp.maximum(h + b1_ref[...], 0.0)
    # output = h @ w2 + b2
    o = jnp.dot(h, w2_ref[...],
                preferred_element_type=jnp.float32, precision=hp)
    out_ref[...] = (o + b2_ref[...]).astype(out_ref.dtype)


def _chip_budget():
    """(max_batch_tile_rows, vmem_limit_bytes, has_two_tensorcores)."""
    try:
        kind = jax.devices()[0].device_kind.lower()
    except Exception:
        kind = ""
    if "7" in kind:
        # v7x: 64 MiB VMEM per TensorCore, 3.2 TB/s HBM, 2 TCs per chip.
        return 2048, 48 << 20, True
    if "v6" in kind or "6e" in kind or "trillium" in kind:
        # v6e: 128 MiB VMEM, ~1.4 TB/s HBM -> big tiles amortize 0.35us/step.
        return 4096, 64 << 20, False
    # v5e (and unknown chips): conservative; double-buffered 2048-row f32 x
    # tile (~15 MiB) + out (~2 MiB) + weights (~0.5 MiB) needs > the 16 MiB
    # scoped default, so lift it explicitly.
    return 2048, 32 << 20, False


def _round_up(x, m):
    return ((x + m - 1) // m) * m


def _pick_batch_tile(batch, max_tile, two_tc):
    """Rows per grid step. On 2-TC chips keep an even, balanced tile count."""
    if batch <= max_tile:
        if two_tc and batch > 1024:
            return _round_up(pl.cdiv(batch, 2), 8)   # grid == 2, both TCs busy
        return batch                                 # whole batch in one block
    if two_tc:
        n_pairs = pl.cdiv(batch, 2 * max_tile)
        return _round_up(pl.cdiv(batch, 2 * n_pairs), 8)  # even grid count
    return max_tile


def _resident_spec(shape):
    """Constant-index-map spec, single-buffered (fetched once, stays in VMEM)."""
    idx = lambda i: (0,) * len(shape)
    try:
        return pl.BlockSpec(shape, idx, pipeline_mode=pl.Buffered(1))
    except Exception:  # very old jax without pipeline_mode / Buffered
        return pl.BlockSpec(shape, idx)


def mlp_1_forward(x, w1, b1, w2, b2):
    """Fused MLP forward: relu(x @ w1 + b1) @ w2 + b2.

    x can be any shape with trailing numel 784 (e.g. NCHW MNIST (B,1,28,28));
    it is flattened like x.view(-1, 784). x is streamed in its native dtype
    (pass bf16 from the producer to halve the dominant HBM stream); the MXU
    accumulates in f32 either way.
    """
    x2d = x.reshape(-1, IN_FEATURES)   # no wrapper-side dtype cast
    B = x2d.shape[0]

    max_tile, vmem_limit, two_tc = _chip_budget()
    tb = _pick_batch_tile(B, max_tile, two_tc)
    grid = (pl.cdiv(B, tb),)

    x_spec = pl.BlockSpec((tb, IN_FEATURES), lambda i: (i, 0))
    out_spec = pl.BlockSpec((tb, OUT_FEATURES), lambda i: (i, 0))
    w1_spec = _resident_spec((IN_FEATURES, HIDDEN))
    b1_spec = _resident_spec((1, HIDDEN))
    w2_spec = _resident_spec((HIDDEN, OUT_FEATURES))
    b2_spec = _resident_spec((1, OUT_FEATURES))

    bytes_accessed = (
        x2d.size * x2d.dtype.itemsize
        + B * OUT_FEATURES * 4
        + (w1.size + b1.size + w2.size + b2.size) * w1.dtype.itemsize
    )
    cost = pl.CostEstimate(
        flops=2 * B * (IN_FEATURES * HIDDEN + HIDDEN * OUT_FEATURES),
        transcendentals=0,
        bytes_accessed=bytes_accessed,
    )

    return pl.pallas_call(
        mlp_kernel,
        out_shape=jax.ShapeDtypeStruct((B, OUT_FEATURES), jnp.float32),
        grid=grid,
        in_specs=[x_spec, w1_spec, b1_spec, w2_spec, b2_spec],
        out_specs=out_spec,
        compiler_params=pltpu.CompilerParams(
            # Batch tiles are independent -> shard across v7x's 2 TensorCores;
            # harmless no-op on single-TC v5e/v6e.
            dimension_semantics=("parallel",),
            vmem_limit_bytes=vmem_limit,
        ),
        cost_estimate=cost,
    )(x2d, w1, b1.reshape(1, -1), w2, b2.reshape(1, -1))
    # Note: (tb, 10) output blocks use masked narrow-lane stores; output is
    # ~1-2% of HBM traffic, so the writeback hides in slack.
    # TODO(synk): only if xprof shows the writeback exposed, stage several grid
    # steps of output in VMEM scratch and write back wider contiguous chunks.


def init_params(key):
    """Deterministic parameter init matching nn.Linear shapes (stored transposed)."""
    k1, k2, k3, k4 = jax.random.split(key, 4)
    bound1 = 1.0 / jnp.sqrt(784.0)
    w1 = jax.random.uniform(k1, (IN_FEATURES, HIDDEN), jnp.float32, -bound1, bound1)
    b1 = jax.random.uniform(k2, (HIDDEN,), jnp.float32, -bound1, bound1)
    bound2 = 1.0 / jnp.sqrt(32.0)
    w2 = jax.random.uniform(k3, (HIDDEN, OUT_FEATURES), jnp.float32, -bound2, bound2)
    b2 = jax.random.uniform(k4, (OUT_FEATURES,), jnp.float32, -bound2, bound2)
    return w1, b1, w2, b2


if __name__ == "__main__":
    key = jax.random.PRNGKey(0)
    kx, kp = jax.random.split(key)
    # MNIST-like NCHW input: (batch=2, channels=1, 28, 28) -> view(-1, 784)
    x = jax.random.normal(kx, (2, 1, 28, 28), jnp.float32)
    w1, b1, w2, b2 = init_params(kp)

    # Exact f32 path (matches the PyTorch module's semantics).
    out = jax.block_until_ready(mlp_1_forward(x, w1, b1, w2, b2))
    hp = jax.lax.Precision.HIGHEST
    ref_h = jnp.maximum(jnp.dot(x.reshape(-1, IN_FEATURES), w1, precision=hp) + b1, 0.0)
    ref = jnp.dot(ref_h, w2, precision=hp) + b2
    assert out.shape == (2, OUT_FEATURES)
    assert jnp.allclose(out, ref, atol=1e-5, rtol=1e-5)

    # bf16 activation stream (producer-side cast): halves the dominant HBM
    # read; same kernel, f32 MXU accumulation.
    out_bf16 = jax.block_until_ready(
        mlp_1_forward(x.astype(jnp.bfloat16), w1, b1, w2, b2))
    assert out_bf16.shape == (2, OUT_FEATURES)
    assert jnp.allclose(out_bf16, ref, atol=5e-2, rtol=5e-2)

    print("KERNEL_OK")
</pallas_src>

<mosaic_0001>
module attributes {stable_mosaic.version = 11 : i64} {
  func.func @mlp_kernel(%arg0: i32, %arg1: memref<2x784xf32, #tpu.memory_space<vmem>>, %arg2: memref<784x32xf32, #tpu.memory_space<vmem>>, %arg3: memref<1x32xf32, #tpu.memory_space<vmem>>, %arg4: memref<32x10xf32, #tpu.memory_space<vmem>>, %arg5: memref<1x10xf32, #tpu.memory_space<vmem>>, %arg6: memref<2x10xf32, #tpu.memory_space<vmem>>) attributes {dimension_semantics = [#tpu.dimension_semantics<parallel>], iteration_bounds = array<i64: 1>, scalar_prefetch = 0 : i64, scratch_operands = 0 : i64, tpu.core_type = #tpu.core_type<tc>, window_params = [{transform_indices = @transform_0, window_bounds = array<i64: 2, 784>}, {pipeline_mode = #tpu.pipeline_mode<synchronous>, transform_indices = @transform_1, window_bounds = array<i64: 784, 32>}, {pipeline_mode = #tpu.pipeline_mode<synchronous>, transform_indices = @transform_2, window_bounds = array<i64: 1, 32>}, {pipeline_mode = #tpu.pipeline_mode<synchronous>, transform_indices = @transform_3, window_bounds = array<i64: 32, 10>}, {pipeline_mode = #tpu.pipeline_mode<synchronous>, transform_indices = @transform_4, window_bounds = array<i64: 1, 10>}, {transform_indices = @transform_5, window_bounds = array<i64: 2, 10>}]} {
    %c0 = arith.constant 0 : index
    %c0_0 = arith.constant 0 : index
    %0 = vector.load %arg1[%c0, %c0_0] : memref<2x784xf32, #tpu.memory_space<vmem>>, vector<2x784xf32>
    %c0_1 = arith.constant 0 : index
    %c0_2 = arith.constant 0 : index
    %1 = vector.load %arg2[%c0_1, %c0_2] : memref<784x32xf32, #tpu.memory_space<vmem>>, vector<784x32xf32>
    %cst = arith.constant dense<0.000000e+00> : vector<2x32xf32>
    %2 = tpu.matmul %0, %1, %cst {dimension_numbers = #tpu.dot_dimension_numbers<[1], [0], [0], [1], [0, 0, 1, 1], [], []>, precision = #tpu.contract_precision<fp32>} : vector<2x784xf32>, vector<784x32xf32>, vector<2x32xf32> -> vector<2x32xf32>
    %c0_3 = arith.constant 0 : index
    %c0_4 = arith.constant 0 : index
    %3 = vector.load %arg3[%c0_3, %c0_4] : memref<1x32xf32, #tpu.memory_space<vmem>>, vector<1x32xf32>
    %4 = vector.broadcast %3 : vector<1x32xf32> to vector<2x32xf32>
    %5 = arith.addf %2, %4 : vector<2x32xf32>
    %cst_5 = arith.constant 0.000000e+00 : f32
    %6 = vector.broadcast %cst_5 : f32 to vector<2x32xf32>
    %7 = arith.maximumf %5, %6 : vector<2x32xf32>
    %c0_6 = arith.constant 0 : index
    %c0_7 = arith.constant 0 : index
    %8 = vector.load %arg4[%c0_6, %c0_7] : memref<32x10xf32, #tpu.memory_space<vmem>>, vector<32x10xf32>
    %cst_8 = arith.constant dense<0.000000e+00> : vector<2x10xf32>
    %9 = tpu.matmul %7, %8, %cst_8 {dimension_numbers = #tpu.dot_dimension_numbers<[1], [0], [0], [1], [0, 0, 1, 1], [], []>, precision = #tpu.contract_precision<fp32>} : vector<2x32xf32>, vector<32x10xf32>, vector<2x10xf32> -> vector<2x10xf32>
    %c0_9 = arith.constant 0 : index
    %c0_10 = arith.constant 0 : index
    %10 = vector.load %arg5[%c0_9, %c0_10] : memref<1x10xf32, #tpu.memory_space<vmem>>, vector<1x10xf32>
    %11 = vector.broadcast %10 : vector<1x10xf32> to vector<2x10xf32>
    %12 = arith.addf %9, %11 : vector<2x10xf32>
    %c0_11 = arith.constant 0 : index
    %c0_12 = arith.constant 0 : index
    %13 = vector.load %arg6[%c0_11, %c0_12] : memref<2x10xf32, #tpu.memory_space<vmem>>, vector<2x10xf32>
    tpu.vector_store %arg6[%c0_11, %c0_12], %12 {strides = array<i32>} : memref<2x10xf32, #tpu.memory_space<vmem>>, vector<2x10xf32>,
    return
  }
  func.func @transform_0(%arg0: i32) -> (i32, i32) {
    %c0_i32 = arith.constant 0 : i32
    %c0_i32_0 = arith.constant 0 : i32
    return %arg0, %c0_i32 : i32, i32
  }
  func.func @transform_1(%arg0: i32) -> (i32, i32) {
    %c0_i32 = arith.constant 0 : i32
    %c0_i32_0 = arith.constant 0 : i32
    %c0_i32_1 = arith.constant 0 : i32
    return %c0_i32, %c0_i32_0 : i32, i32
  }
  func.func @transform_2(%arg0: i32) -> (i32, i32) {
    %c0_i32 = arith.constant 0 : i32
    %c0_i32_0 = arith.constant 0 : i32
    %c0_i32_1 = arith.constant 0 : i32
    return %c0_i32, %c0_i32_0 : i32, i32
  }
  func.func @transform_3(%arg0: i32) -> (i32, i32) {
    %c0_i32 = arith.constant 0 : i32
    %c0_i32_0 = arith.constant 0 : i32
    %c0_i32_1 = arith.constant 0 : i32
    return %c0_i32, %c0_i32_0 : i32, i32
  }
  func.func @transform_4(%arg0: i32) -> (i32, i32) {
    %c0_i32 = arith.constant 0 : i32
    %c0_i32_0 = arith.constant 0 : i32
    %c0_i32_1 = arith.constant 0 : i32
    return %c0_i32, %c0_i32_0 : i32, i32
  }
  func.func @transform_5(%arg0: i32) -> (i32, i32) {
    %c0_i32 = arith.constant 0 : i32
    %c0_i32_0 = arith.constant 0 : i32
    return %arg0, %c0_i32 : i32, i32
  }
}

</mosaic_0001>

<bundles_post_ra>
// kernel: tpu_custom_call.1
= control target key start
LH: loop header
LB: loop body
LE: loop exit
PB: predicated region body
PF: predicated region fallthrough
CT: control target
= control target key end

     0   :  { %v4550_v16 = vmov 1983009808   ;;  %s6865_s0 = inlined_call_operand.vmem [shape: f32[2,784], index: 0, kind: input, shape index: {}]   ;;  %s6866_s1 = inlined_call_operand.vmem [shape: f32[784,32], index: 1, kind: input, shape index: {}]   ;;  %s6867_s2 = inlined_call_operand.vmem [shape: f32[1,32], index: 2, kind: input, shape index: {}]   ;;  %s6868_s3 = inlined_call_operand.vmem [shape: f32[32,10], index: 3, kind: input, shape index: {}]   ;;  %s6869_s4 = inlined_call_operand.vmem [shape: f32[1,10], index: 4, kind: input, shape index: {}]   ;;  %s6870_s5 = inlined_call_operand.hbm [shape: f32[2,10], index: 5, kind: output, shape index: {}]  }
   0x1   :  { %v54_v0 = vld [vmem:[%s6866_s1 + $0xf8] sm:$0xff]  ;;  %v53_v2 = vld [vmem:[%s6866_s1 + $0xf0] sm:$0xff]  ;;  %v52_v7 = vld [vmem:[%s6866_s1 + $0xe8] sm:$0xff]  ;;  %v4625_v17 = vunpack.c.l.s4 %v4550_v16 }
   0x2   :  { %v38_v1 = vld [vmem:[%s6866_s1 + $0x78] sm:$0xff]  ;;  %v4593_v3 = vand.u32 4294901760, %v54_v0  ;;  %v4597_v5 = vand.u32 4294901760, %v53_v2  ;;  %v37_v6 = vld [vmem:[%s6866_s1 + $0x70] sm:$0xff]  ;;  %v36_v8 = vld [vmem:[%s6866_s1 + $0x68] sm:$0xff]  ;;  %v4610_v11 = vand.u32 4294901760, %v52_v7 }
   0x3   :  { %v4595_v4 = vand.u32 4294901760, %v38_v1  ;;  %v4608_v10 = vand.u32 4294901760, %v37_v6  ;;  %v4612_v12 = vand.u32 4294901760, %v36_v8  ;;  %v51_v13 = vld [vmem:[%s6866_s1 + $0xe0] sm:$0xff]  ;;  %v4623_v15 = vld [vmem:[%s6866_s1 + $0xd8] sm:$0xff]  ;;  %v4646_v23 = vld [vmem:[%s6866_s1 + $0xd0] sm:$0xff] }
   0x4   :  { %v35_v14 = vld [vmem:[%s6866_s1 + $0x60] sm:$0xff]  ;;  %3736 = vmatprep.subr.mxu0 %v4593_v3  ;;  %v4628_v18 = vand.u32 4294901760, %v51_v13  ;;  %v4633_v20 = vand.u32 4294901760, %v4623_v15  ;;  %v4636_v21 = vsub.f32 %v54_v0, %v4593_v3  ;;  %v4641_v22 = vld [vmem:[%s6866_s1 + $0x58] sm:$0xff]  ;;  %v4651_v24 = vld [vmem:[%s6866_s1 + $0x50] sm:$0xff]  ;;  %v4661_v27 = vand.u32 4294901760, %v4646_v23 }
   0x5   :  { %v4630_v19 = vand.u32 4294901760, %v35_v14  ;;  %3737 = vmatpush3.msra.mxu0 %v4595_v4  ;;  %v4655_v25 = vand.u32 4294901760, %v4641_v22  ;;  %v4658_v26 = vsub.f32 %v38_v1, %v4595_v4  ;;  %v4664_v28 = vsub.f32 %v53_v2, %v4597_v5  ;;  %v4669_v29 = vld [vmem:[%s6866_s1 + $0xc8] sm:$0xff]  ;;  %v4679_v31 = vld [vmem:[%s6866_s1 + $0xc0] sm:$0xff]  ;;  %v4731_v49 = vld [vmem:[%s6866_s1 + $0xb8] sm:$0xff] }
   0x6   :  { %7084 = vst [vmem:[#allocation5_spill] sm:$0xff] %v4636_v21  ;;  %v4674_v30 = vld [vmem:[%s6866_s1 + $0x48] sm:$0xff]  ;;  %3738 = vmatprep.subr.mxu0 %v4597_v5  ;;  %v6883_v32 = vand.u32 4294901760, %v4636_v21  ;;  %v4684_v33 = vand.u32 4294901760, %v4651_v24  ;;  %v4687_v34 = vsub.f32 %v37_v6, %v4608_v10  ;;  %v4690_v35 = vand.u32 4294901760, %v4669_v29  ;;  %v4704_v40 = vld [vmem:[%s6866_s1 + $0x40] sm:$0xff] }
   0x7   :  { %3739 = vmatpush3.msra.mxu0 %v4608_v10  ;;  %v6882_v36 = vand.u32 4294901760, %v4658_v26  ;;  %v6880_v37 = vand.u32 4294901760, %v4664_v28  ;;  %v4696_v38 = vsub.f32 %v52_v7, %v4610_v11  ;;  %v4699_v39 = vand.u32 4294901760, %v4674_v30  ;;  %v4744_v54 = vld [vmem:[%s6866_s1 + $0x38] sm:$0xff]  ;;  %v4754_v59 = vld [vmem:[%s6866_s1 + $0xb0] sm:$0xff]  ;;  %v4921_v9 = vld [vmem:[%s6866_s1 + $0x88] sm:$0xff] }
   0x8   :  { %3740 = vmatprep.subr.mxu0 %v4610_v11  ;;  %v400_v41 = vsub.f32 %v4636_v21, %v6883_v32  ;;  %v6878_v42 = vand.u32 4294901760, %v4687_v34  ;;  %v4712_v43 = vsub.f32 %v36_v8, %v4612_v12  ;;  %v4715_v44 = vand.u32 4294901760, %v4679_v31  ;;  %v4769_v0 = vld [vmem:[%s6866_s1 + $0x30] sm:$0xff]  ;;  %v4785_v8 = vld [vmem:[%s6866_s1 + $0xa8] sm:$0xff] }
   0x9   :  { %3741 = vmatpush3.msra.mxu0 %v4612_v12  ;;  %v288_v45 = vsub.f32 %v4658_v26, %v6882_v36  ;;  %v407_v46 = vsub.f32 %v4664_v28, %v6880_v37  ;;  %v6877_v47 = vand.u32 4294901760, %v4696_v38  ;;  %v4726_v48 = vsub.f32 %v51_v13, %v4628_v18  ;;  %v4894_v37 = vld [vmem:[%s6866_s1 + $0x90] sm:$0xff] }
   0xa   :  { %7085 = vst [vmem:[#allocation6_spill] sm:$0xff] %v4715_v44  ;;  %3742 = vmatprep.subr.mxu0 %v4628_v18  ;;  %v401_v50 = vand.u32 4294901760, %v400_v41  ;;  %v295_v51 = vsub.f32 %v4687_v34, %v6878_v42  ;;  %v6875_v52 = vand.u32 4294901760, %v4712_v43  ;;  %v4739_v53 = vand.u32 4294901760, %v4704_v40  ;;  %v4799_v41 = vld [vmem:[%s6866_s1 + $0x28] sm:$0xff]  ;;  %v4878_v42 = vld [vmem:[%s6866_s1 + $0x18] sm:$0xff] }
   0xb   :  { %3743 = vmatpush3.msra.mxu0 %v4630_v19  ;;  %v289_v55 = vand.u32 4294901760, %v288_v45  ;;  %v408_v56 = vand.u32 4294901760, %v407_v46  ;;  %v414_v57 = vsub.f32 %v4696_v38, %v6877_v47  ;;  %v6873_v58 = vand.u32 4294901760, %v4726_v48 }
   0xc   :  { %7086 = vst [vmem:[#allocation7_spill] sm:$0xff] %v4739_v53  ;;  %3744 = vmatprep.subr.mxu0 %v4633_v20  ;;  %3771 = vmatprep.subr.mxu1 %v401_v50  ;;  %v296_v60 = vand.u32 4294901760, %v295_v51  ;;  %v302_v61 = vsub.f32 %v4712_v43, %v6875_v52  ;;  %v4761_v62 = vsub.f32 %v35_v14, %v4630_v19  ;;  %v4764_v63 = vand.u32 4294901760, %v4731_v49 }
   0xd   :  { %3745 = vmatpush3.msra.mxu0 %v4655_v25  ;;  %3772 = vmatpush3.msra.mxu1 %v289_v55  ;;  %v415_v1 = vand.u32 4294901760, %v414_v57  ;;  %v421_v2 = vsub.f32 %v4726_v48, %v6873_v58  ;;  %v4777_v6 = vsub.f32 %v4623_v15, %v4633_v20  ;;  %v4780_v7 = vand.u32 4294901760, %v4744_v54 }
   0xe   :  { %7087 = vst [vmem:[#allocation8_spill] sm:$0xff] %v4764_v63  ;;  %3746 = vmatprep.subr.mxu0 %v4661_v27  ;;  %3773 = vmatprep.subr.mxu1 %v408_v56  ;;  %v303_v13 = vand.u32 4294901760, %v302_v61  ;;  %v6871_v14 = vand.u32 4294901760, %v4761_v62  ;;  %v4791_v16 = vsub.f32 %v4641_v22, %v4655_v25  ;;  %v4794_v15 = vand.u32 4294901760, %v4754_v59 }
   0xf   :  { %7088 = vst [vmem:[#allocation9_spill] sm:$0xff] %v4780_v7  ;;  %3747 = vmatpush3.msra.mxu0 %v4684_v33  ;;  %3774 = vmatpush3.msra.mxu1 %v296_v60  ;;  %v422_v45 = vand.u32 4294901760, %v421_v2  ;;  %v6872_v46 = vand.u32 4294901760, %v4777_v6  ;;  %v4805_v50 = vsub.f32 %v4646_v23, %v4661_v27  ;;  %v4808_v22 = vand.u32 4294901760, %v4769_v0  ;;  %v4825_v23 = vld [vmem:[%s6866_s1 + $0xa0] sm:$0xff] }
  0x10   :  { %7089 = vst [vmem:[#allocation10_spill] sm:$0xff] %v4794_v15  ;;  %3748 = vmatprep.subr.mxu0 %v4690_v35  ;;  %3775 = vmatprep.subr.mxu1 %v415_v1  ;;  %v309_v51 = vsub.f32 %v4761_v62, %v6871_v14  ;;  %v6874_v55 = vand.u32 4294901760, %v4791_v16  ;;  %v4817_v56 = vsub.f32 %v4651_v24, %v4684_v33  ;;  %v4820_v57 = vand.u32 4294901760, %v4785_v8 }
  0x11   :  { %7090 = vst [vmem:[#allocation11_spill] sm:$0xff] %v4808_v22  ;;  %3749 = vmatpush3.msra.mxu0 %v4699_v39  ;;  %3776 = vmatpush3.msra.mxu1 %v303_v13  ;;  %v428_v60 = vsub.f32 %v4777_v6, %v6872_v46  ;;  %v6876_v61 = vand.u32 4294901760, %v4805_v50  ;;  %v4834_v24 = vsub.f32 %v4669_v29, %v4690_v35  ;;  %v4837_v1 = vand.u32 4294901760, %v4799_v41  ;;  %v4851_v29 = vld [vmem:[%s6866_s1 + $0x20] sm:$0xff] }
  0x12   :  { %7091 = vst [vmem:[#allocation12_spill] sm:$0xff] %v4820_v57  ;;  %3750 = vmatprep.subr.mxu0 %v4715_v44  ;;  %3777 = vmatprep.subr.mxu1 %v422_v45  ;;  %v310_v2 = vand.u32 4294901760, %v309_v51  ;;  %v316_v13 = vsub.f32 %v4791_v16, %v6874_v55  ;;  %v6879_v14 = vand.u32 4294901760, %v4817_v56  ;;  %v4846_v46 = vsub.f32 %v4674_v30, %v4699_v39  ;;  %v4864_v30 = vld [vmem:[%s6866_s1 + $0x98] sm:$0xff] }
  0x13   :  { %7092 = vst [vmem:[#allocation13_spill] sm:$0xff] %v4837_v1  ;;  %3751 = vmatpush3.msra.mxu0 %v4739_v53  ;;  %v429_v58 = vand.u32 4294901760, %v428_v60  ;;  %v435_v45 = vsub.f32 %v4805_v50, %v6876_v61  ;;  %v6881_v51 = vand.u32 4294901760, %v4834_v24  ;;  %v4859_v55 = vand.u32 4294901760, %v4825_v23 }
  0x14   :  { %3778 = vmatpush3.msra.mxu1 %v310_v2  ;;  %3752 = vmatprep.subr.mxu0 %v4764_v63  ;;  %v317_v52 = vand.u32 4294901760, %v316_v13  ;;  %v323_v60 = vsub.f32 %v4817_v56, %v6879_v14  ;;  %v6884_v61 = vand.u32 4294901760, %v4846_v46  ;;  %v4873_v47 = vsub.f32 %v4679_v31, %v4715_v44 }
  0x15   :  { %7093 = vst [vmem:[#allocation14_spill] sm:$0xff] %v4859_v55  ;;  %3779 = vmatprep.subr.mxu1 %v429_v58  ;;  %3753 = vmatpush3.msra.mxu0 %v4780_v7  ;;  %v436_v2 = vand.u32 4294901760, %v435_v45  ;;  %v442_v13 = vsub.f32 %v4834_v24, %v6881_v51  ;;  %v4885_v14 = vand.u32 4294901760, %v4851_v29  ;;  %v4889_v31 = vsub.f32 %v4704_v40, %v4739_v53  ;;  %v4907_v40 = vld [vmem:[%s6866_s1 + $0x10] sm:$0xff] }
  0x16   :  { %3780 = vmatpush3.msra.mxu1 %v317_v52  ;;  %3754 = vmatprep.subr.mxu0 %v4794_v15  ;;  %v324_v58 = vand.u32 4294901760, %v323_v60  ;;  %v330_v45 = vsub.f32 %v4846_v46, %v6884_v61  ;;  %v6889_v51 = vand.u32 4294901760, %v4873_v47  ;;  %v4902_v36 = vand.u32 4294901760, %v4864_v30 }
  0x17   :  { %7094 = vst [vmem:[#allocation15_spill] sm:$0xff] %v4885_v14  ;;  %7095 = vst [vmem:[#allocation16_spill] sm:$0xff] %v4889_v31  ;;  %3781 = vmatprep.subr.mxu1 %v436_v2  ;;  %3755 = vmatpush3.msra.mxu0 %v4808_v22  ;;  %v443_v52 = vand.u32 4294901760, %v442_v13  ;;  %v4913_v32 = vsub.f32 %v4731_v49, %v4764_v63  ;;  %v4916_v61 = vand.u32 4294901760, %v4878_v42 }
  0x18   :  { %7096 = vst [vmem:[#allocation17_spill] sm:$0xff] %v4902_v36 }
  0x19   :  { %7097 = vst [vmem:[#allocation18_spill] sm:$0xff] %v4916_v61 }
  0x1a   :  { %10 = vsyncpa [#allocation3], 0  ;;  %3782 = vmatpush3.msra.mxu1 %v324_v58  ;;  %3756 = vmatprep.subr.mxu0 %v4820_v57  ;;  %v331_v2 = vand.u32 4294901760, %v330_v45  ;;  %v449_v13 = vsub.f32 %v4873_v47, %v6889_v51  ;;  %v4929_v49 = vsub.f32 %v4744_v54, %v4780_v7  ;;  %v4932_v60 = vand.u32 4294901760, %v4894_v37  ;;  %v4949_v54 = vld [vmem:[%s6866_s1 + $0x8] sm:$0xff]  ;;  %s4553_s25 = smov [#allocation2]  }
  0x1b   :  { %3783 = vmatprep.subr.mxu1 %v443_v52  ;;  %3757 = vmatpush3.msra.mxu0 %v4837_v1  ;;  %v7100_v63 = vand.u32 4294901760, %v4889_v31  ;;  %v4941_v53 = vsub.f32 %v4754_v59, %v4794_v15  ;;  %v4944_v51 = vand.u32 4294901760, %v4907_v40  ;;  %v4955_v45 = vsub.f32 %v4769_v0, %v4808_v22  ;;  %v4963_v15 = vld [vmem:[%s6866_s1 + $0x80] sm:$0xff]  ;;  %s3726_s26 = sshll.u32 %s4553_s25, 4  ;;  %s3727_s26 = int_to_ptr.vmem [resolvable:$true] %s3726_s26 }
  0x1c   :  { %7098 = vst [vmem:[#allocation19_spill] sm:$0xff] %v4929_v49  ;;  %7099 = vst [vmem:[#allocation20_spill] sm:$0xff] %v4932_v60  ;;  %3784 = vmatpush3.msra.mxu1 %v331_v2  ;;  %3758 = vmatprep.subr.mxu0 %v4859_v55  ;;  %v450_v52 = vand.u32 4294901760, %v449_v13  ;;  %v4958_v59 = vand.u32 4294901760, %v4921_v9  ;;  %v7104_v7 = vand.u32 4294901760, %v4913_v32  ;;  %v4972_v0 = vsub.f32 %v4785_v8, %v4820_v57  ;;  %v4989_v8 = vld [vmem:[%s6866_s1] sm:$0xff]  ;;  %p4533_p1 = scmp.lt.s32.totalorder %s3727_s26, %s3727_s26 }
  0x1d   :  { %v337_v58 = vsub.f32 %v4889_v31, %v7100_v63  ;;  %7101 = vst [vmem:[#allocation21_spill] sm:$0xff] %v4941_v53  ;;  %7102 = vst [vmem:[#allocation22_spill] sm:$0xff] %v4944_v51  ;;  %3759 = vmatpush3.msra.mxu0 %v4885_v14  ;;  %v6906_v63 = vand.u32 4294901760, %v4941_v53  ;;  %v7106_v22 = vand.u32 4294901760, %v4929_v49  ;;  %v4997_v57 = vand.u32 4294901760, %v4963_v15  ;;  %s4528_s27 = scalar_lea.vmem %s3727_s26, 32 }
  0x1e   :  { %7103 = vst [vmem:[#allocation23_spill] sm:$0xff] %v4958_v59  ;;  %v456_v13 = vsub.f32 %v4913_v32, %v7104_v7  ;;  %7105 = vst [vmem:[#allocation24_spill] sm:$0xff] %v4972_v0  ;;  %3785 = vmatprep.subr.mxu1 %v450_v52  ;;  %3760 = vmatprep.subr.mxu0 %v4902_v36  ;;  %v4984_v7 = vsub.f32 %v4799_v41, %v4837_v1  ;;  %v6911_v31 = vand.u32 4294901760, %v4972_v0  ;;  %vm169_vm0 = vcmask 130048   ;;  %p4529_p0 = scmp.ne.s32.totalorder %s3727_s26, %s4528_s27  ;;  %p4534_p2 = scmp.lt.s32.totalorder %s4528_s27, %s4528_s27 }
  0x1f   :  { %v338_v2 = vand.u32 4294901760, %v337_v58  ;;  %v344_v44 = vsub.f32 %v4929_v49, %v7106_v22  ;;  %v4980_v58 = vand.u32 4294901760, %v4949_v54  ;;  %3761 = vmatpush3.msra.mxu0 %v4916_v61  ;;  %v463_v22 = vsub.f32 %v4941_v53, %v6906_v63 }
  0x20   :  { %v457_v52 = vand.u32 4294901760, %v456_v13  ;;  %3762 = vmatprep.subr.mxu0 %v4932_v60  ;;  %v7108_v1 = vand.u32 4294901760, %v4955_v45  ;;  %v5006_v13 = vsub.f32 %v4825_v23, %v4859_v55  ;;  %v5013_v53 = vand.u32 4294901760, %v4989_v8  ;;  %p4535_p3 = por %p4534_p2, %p4533_p1 }
  0x21   :  { %7107 = vst [vmem:[#allocation25_spill] sm:$0xff] %v4980_v58  ;;  %3786 = vmatpush3.msra.mxu1 %v338_v2  ;;  %v345_v41 = vand.u32 4294901760, %v344_v44  ;;  %v464_v63 = vand.u32 4294901760, %v463_v22  ;;  %3763 = vmatpush3.msra.mxu0 %v4944_v51  ;;  %v470_v44 = vsub.f32 %v4972_v0, %v6911_v31  ;;  %v7110_v23 = vand.u32 4294901760, %v4984_v7 }
  0x22   :  { %v351_v49 = vsub.f32 %v4955_v45, %v7108_v1  ;;  %3787 = vmatprep.subr.mxu1 %v457_v52  ;;  %7109 = vst [vmem:[#allocation26_spill] sm:$0xff] %v5013_v53  ;;  %v5017_v1 = vsub.f32 %v4851_v29, %v4885_v14  ;;  %3764 = vmatprep.subr.mxu0 %v4958_v59  ;;  %v6916_v22 = vand.u32 4294901760, %v5006_v13  ;;  %v133_v0 = vunpack.c.0.s8 %v4625_v17  ;;  %p4536_p4 = pnand %p4535_p3, %p4529_p0 }
  0x23   :  { %3788 = vmatpush3.msra.mxu1 %v345_v41  ;;  %v358_v52 = vsub.f32 %v4984_v7, %v7110_v23  ;;  %v471_v55 = vand.u32 4294901760, %v470_v44  ;;  %3765 = vmatpush3.msra.mxu0 %v4980_v58  ;;  %v7111_v29 = vlaneseq  ;;  %v5039_v44 = vsub.f32 %v4864_v30, %v4902_v36 }
  0x24   :  { %v352_v2 = vand.u32 4294901760, %v351_v49  ;;  %3789 = vmatprep.subr.mxu1 %v464_v63  ;;  %v6917_v31 = vand.u32 4294901760, %v5017_v1  ;;  %3766 = vmatprep.subr.mxu0 %v4997_v57  ;;  %v477_v41 = vsub.f32 %v5006_v13, %v6916_v22  ;;  %v5035_v63 = vld [vmem:[%s6865_s0] sm:$0xff]  ;;  %v5043_v17 = vsub.f32 %v4878_v42, %v4916_v61 }
  0x25   :  { %v135_v14 = vshrl.u32 %v7111_v29, 7  ;;  %v359_v49 = vand.u32 4294901760, %v358_v52  ;;  %7112 = vst [vmem:[#allocation27_spill] sm:$0xff] %v5035_v63  ;;  %3767 = vmatpush3.msra.mxu0 %v5013_v53  ;;  %v5053_v52 = vsub.f32 %v4894_v37, %v4932_v60  ;;  %v6918_v29 = vand.u32 4294901760, %v5039_v44 }
  0x26   :  { %3790 = vmatpush3.msra.mxu1 %v352_v2  ;;  %v365_v2 = vsub.f32 %v5017_v1, %v6917_v31  ;;  %v478_v30 = vand.u32 4294901760, %v477_v41  ;;  %3806 = vmatprep.subr.mxu0 %v4636_v21  ;;  %v6923_v42 = vand.u32 4294901760, %v5043_v17  ;;  %v5067_v37 = vsub.f32 %v4921_v9, %v4958_v59 }
  0x27   :  { %3791 = vmatprep.subr.mxu1 %v471_v55  ;;  %v5049_v23 = vsub.s32 %v133_v0, %v135_v14  ;;  %v5060_v55 = vsub.f32 %v4907_v40, %v4944_v51  ;;  %v7115_v9 = vand.u32 4294901760, %v5053_v52  ;;  %vm4552_vm1 = vmmov 0  }
  0x28   :  { %3792 = vmatpush3.msra.mxu1 %v359_v49  ;;  %v366_v22 = vand.u32 4294901760, %v365_v2  ;;  %v484_v49 = vsub.f32 %v5039_v44, %v6918_v29  ;;  %v372_v40 = vsub.f32 %v5043_v17, %v6923_v42  ;;  %v5078_v2 = vsub.f32 %v4949_v54, %v4980_v58 }
  0x29   :  { %7113 = vst [vmem:[#allocation28_spill] sm:$0xff] %v5049_v23  ;;  %v137_v14 = vrot.slane %v5035_v63, %v5049_v23  ;;  %3793 = vmatprep.subr.mxu1 %v478_v30  ;;  %v6929_v41 = vand.u32 4294901760, %v5060_v55  ;;  %v491_v30 = vsub.f32 %v5053_v52, %v7115_v9  ;;  %v6931_v29 = vand.u32 4294901760, %v5067_v37 }
  0x2a   :  { %3794 = vmatpush3.msra.mxu1 %v366_v22  ;;  %v485_v23 = vand.u32 4294901760, %v484_v49  ;;  %v373_v63 = vand.u32 4294901760, %v372_v40  ;;  %v6930_v21 = vand.u32 4294901760, %v5078_v2  ;;  %v5103_v40 = vsub.f32 %v4963_v15, %v4997_v57 }
  0x2b   :  { %v145_v31 = vcombine.high %v137_v14, %v137_v14  ;;  %v5080_v0 = vand.u32 4294901760, %v137_v14  ;;  %v379_v42 = vsub.f32 %v5060_v55, %v6929_v41  ;;  %v492_v58 = vand.u32 4294901760, %v491_v30 }
  0x2c   :  { %v498_v9 = vsub.f32 %v5067_v37, %v6931_v29  ;;  %3795 = vmatprep.subr.mxu1 %v485_v23  ;;  %v386_v49 = vsub.f32 %v5078_v2, %v6930_v21  ;;  %v5107_v41 = vsub.f32 %v4989_v8, %v5013_v53  ;;  %v6937_v21 = vand.u32 4294901760, %v5103_v40 }
  0x2d   :  { %7114 = vst [vmem:[#allocation29_spill] sm:$0xff] %v5080_v0  ;;  %v5090_v54 = vand.u32 4294901760, %v145_v31  ;;  %v5093_v22 = vsub.f32 %v137_v14, %v5080_v0  ;;  %v380_v59 = vand.u32 4294901760, %v379_v42  ;;  %3796 = vmatpush3.msra.mxu1 %v373_v63  ;;  %vm3229_vm2 = vcmask 261120  }
  0x2e   :  { %7117 = vst [vmem:[#allocation31_spill] sm:$0xff] %v5107_v41  ;;  %v499_v23 = vand.u32 4294901760, %v498_v9  ;;  %3797 = vmatprep.subr.mxu1 %v492_v58  ;;  %v387_v42 = vand.u32 4294901760, %v386_v49  ;;  %v6936_v15 = vand.u32 4294901760, %v5107_v41  ;;  %vm3718_vm3 = vcmask 74752  }
  0x2f   :  { %7116 = vst [vmem:[#allocation30_spill] sm:$0xff] %v5090_v54  ;;  %v5110_v14 = vsub.f32 %v145_v31, %v5090_v54  ;;  %v6938_v30 = vand.u32 4294901760, %v5093_v22  ;;  %509 = vmatprep.mubr.f32.mxu1 %v5090_v54  ;;  %3798 = vmatpush3.msra.mxu1 %v380_v59  ;;  %v505_v31 = vsub.f32 %v5103_v40, %v6937_v21  ;;  %v7119_v59 = vld [vmem:[#allocation6_spill] sm:$0xff] }
  0x30   :  { %3799 = vmatprep.subr.mxu1 %v499_v23  ;;  %v393_v58 = vsub.f32 %v5107_v41, %v6936_v15  ;;  %v7121_v23 = vld [vmem:[#allocation19_spill] sm:$0xff]  ;;  %v7129_v15 = vld [vmem:[#allocation13_spill] sm:$0xff]  ;;  %v7130_v21 = vld [vmem:[#allocation14_spill] sm:$0xff] }
  0x31   :  { %v6939_v29 = vand.u32 4294901760, %v5110_v14  ;;  %v277_v8 = vsub.f32 %v5093_v22, %v6938_v30  ;;  %3800 = vmatpush3.msra.mxu1 %v387_v42  ;;  %v506_v49 = vand.u32 4294901760, %v505_v31  ;;  %v7122_v42 = vld [vmem:[#allocation8_spill] sm:$0xff]  ;;  %v7124_v31 = vld [vmem:[#allocation9_spill] sm:$0xff]  ;;  %v7131_v30 = vld [vmem:[#allocation15_spill] sm:$0xff] }
  0x32   :  { %v394_v54 = vand.u32 4294901760, %v393_v58  ;;  %v7125_v58 = vld [vmem:[#allocation10_spill] sm:$0xff] }
  0x33   :  { %v271_v63 = vsub.f32 %v5110_v14, %v6939_v29  ;;  %v278_v9 = vand.u32 4294901760, %v277_v8  ;;  %3801 = vmatprep.subr.mxu1 %v506_v49  ;;  %v7123_v8 = vld [vmem:[#allocation21_spill] sm:$0xff]  ;;  %v7128_v49 = vld [vmem:[#allocation12_spill] sm:$0xff]  ;;  %v7132_v29 = vld [vmem:[#allocation23_spill] sm:$0xff] }
  0x34   :  { %3802 = vmatpush3.msra.mxu1 %v394_v54  ;;  %v7120_v54 = vld [vmem:[#allocation7_spill] sm:$0xff] }
  0x35   :  { %v272_v53 = vand.u32 4294901760, %v271_v63  ;;  %511 = vmatmul.mubr.f32.vlgmr.msra.gmra.mxu1 %v5080_v0  ;;  %3841 = vmatprep.subr.mxu1 %v4593_v3  ;;  %v7126_v63 = vld [vmem:[#allocation24_spill] sm:$0xff]  ;;  %v7133_v0 = vld [vmem:[#allocation25_spill] sm:$0xff] }
  0x36   :  { %3842 = vmatpush3.msra.mxu1 %v4595_v4 }
  0x37   :  { %273 = vmatprep.mubr.f32.mxu0 %v272_v53  ;;  %3843 = vmatprep.subr.mxu1 %v4597_v5  ;;  %v7118_v53 = vld [vmem:[#allocation16_spill] sm:$0xff] }
  0x38   :  { %279 = vmatmul.mubr.f32.vlgmr.msra.gmra.mxu0 %v278_v9  ;;  %3844 = vmatpush3.msra.mxu1 %v4608_v10  ;;  %v7127_v9 = vld [vmem:[#allocation11_spill] sm:$0xff] }
  0x39   :  { %3807 = vmatpush3.msra.mxu0 %v4658_v26  ;;  %3845 = vmatprep.subr.mxu1 %v4610_v11 }
  0x3a   :  { %3808 = vmatprep.subr.mxu0 %v4664_v28  ;;  %3846 = vmatpush3.msra.mxu1 %v4612_v12 }
  0x3b   :  { %3809 = vmatpush3.msra.mxu0 %v4687_v34  ;;  %3847 = vmatprep.subr.mxu1 %v4628_v18 }
  0x3c   :  { %3810 = vmatprep.subr.mxu0 %v4696_v38  ;;  %3848 = vmatpush3.msra.mxu1 %v4630_v19 }
  0x3d   :  { %3811 = vmatpush3.msra.mxu0 %v4712_v43  ;;  %3849 = vmatprep.subr.mxu1 %v4633_v20 }
  0x3e   :  { %3812 = vmatprep.subr.mxu0 %v4726_v48  ;;  %3850 = vmatpush3.msra.mxu1 %v4655_v25 }
  0x3f   :  { %3813 = vmatpush3.msra.mxu0 %v4761_v62  ;;  %3851 = vmatprep.subr.mxu1 %v4661_v27 }
  0x40   :  { %3814 = vmatprep.subr.mxu0 %v4777_v6  ;;  %3852 = vmatpush3.msra.mxu1 %v4684_v33 }
  0x41   :  { %3815 = vmatpush3.msra.mxu0 %v4791_v16  ;;  %3853 = vmatprep.subr.mxu1 %v4690_v35 }
  0x42   :  { %3816 = vmatprep.subr.mxu0 %v4805_v50  ;;  %3854 = vmatpush3.msra.mxu1 %v4699_v39 }
  0x43   :  { %3817 = vmatpush3.msra.mxu0 %v4817_v56  ;;  %3855 = vmatprep.subr.mxu1 %v7119_v59 }
  0x44   :  { %3818 = vmatprep.subr.mxu0 %v4834_v24  ;;  %3856 = vmatpush3.msra.mxu1 %v7120_v54 }
  0x45   :  { %3819 = vmatpush3.msra.mxu0 %v4846_v46  ;;  %3857 = vmatprep.subr.mxu1 %v7122_v42 }
  0x46   :  { %3820 = vmatprep.subr.mxu0 %v4873_v47  ;;  %3858 = vmatpush3.msra.mxu1 %v7124_v31 }
  0x47   :  { %3821 = vmatpush3.msra.mxu0 %v7118_v53  ;;  %3859 = vmatprep.subr.mxu1 %v7125_v58 }
  0x48   :  { %3822 = vmatprep.subr.mxu0 %v4913_v32  ;;  %3860 = vmatpush3.msra.mxu1 %v7127_v9 }
  0x49   :  { %3823 = vmatpush3.msra.mxu0 %v7121_v23  ;;  %3861 = vmatprep.subr.mxu1 %v7128_v49 }
  0x4a   :  { %3824 = vmatprep.subr.mxu0 %v7123_v8  ;;  %3862 = vmatpush3.msra.mxu1 %v7129_v15 }
  0x4b   :  { %3825 = vmatpush3.msra.mxu0 %v4955_v45  ;;  %3863 = vmatprep.subr.mxu1 %v7130_v21 }
  0x4c   :  { %3826 = vmatprep.subr.mxu0 %v7126_v63  ;;  %646 = vmatprep.mubr.f32.mxu0 %v5110_v14 }
  0x4d   :  { %3827 = vmatpush3.msra.mxu0 %v4984_v7  ;;  %3864 = vmatpush3.msra.mxu1 %v7131_v30  ;;  %v7136_v30 = vand.u32 4294901760, %v4658_v26  ;;  %v7143_v26 = vand.u32 4294901760, %v4712_v43  ;;  %v7147_v43 = vand.u32 4294901760, %v4791_v16  ;;  %v84_v16 = vld [vmem:[%s6866_s1 + $0x1e8] sm:$0xff] }
  0x4e   :  { %3828 = vmatprep.subr.mxu0 %v5006_v13  ;;  %3865 = vmatprep.subr.mxu1 %v4902_v36  ;;  %v7134_v36 = vld [vmem:[#allocation5_spill] sm:$0xff] }
  0x4f   :  { %3829 = vmatpush3.msra.mxu0 %v5017_v1  ;;  %3866 = vmatpush3.msra.mxu1 %v4916_v61  ;;  %v7135_v61 = vand.u32 4294901760, %v7134_v36  ;;  %v7142_v36 = vand.u32 4294901760, %v5093_v22 }
  0x50   :  { %3830 = vmatprep.subr.mxu0 %v5039_v44  ;;  %3867 = vmatprep.subr.mxu1 %v4932_v60  ;;  %v7138_v60 = vld [vmem:[#allocation26_spill] sm:$0xff] }
  0x51   :  { %3831 = vmatpush3.msra.mxu0 %v5043_v17  ;;  %3868 = vmatpush3.msra.mxu1 %v4944_v51  ;;  %v7137_v51 = vand.u32 4294901760, %v4664_v28  ;;  %v7144_v28 = vand.u32 4294901760, %v4726_v48  ;;  %v69_v48 = vld [vmem:[%s6866_s1 + $0x170] sm:$0xff] }
  0x52   :  { %3832 = vmatprep.subr.mxu0 %v5053_v52  ;;  %3869 = vmatprep.subr.mxu1 %v7132_v29  ;;  %v7139_v29 = vand.u32 4294901760, %v4687_v34  ;;  %v7145_v34 = vand.u32 4294901760, %v4761_v62  ;;  %v7152_v62 = vand.u32 4294901760, %v4873_v47 }
  0x53   :  { %3833 = vmatpush3.msra.mxu0 %v5060_v55  ;;  %3870 = vmatpush3.msra.mxu1 %v7133_v0  ;;  %v7140_v0 = vand.u32 4294901760, %v5110_v14 }
  0x54   :  { %3834 = vmatprep.subr.mxu0 %v5067_v37  ;;  %3871 = vmatprep.subr.mxu1 %v4997_v57 }
  0x55   :  { %3835 = vmatpush3.msra.mxu0 %v5078_v2  ;;  %3872 = vmatpush3.msra.mxu1 %v7138_v60 }
  0x56   :  { %3836 = vmatprep.subr.mxu0 %v5103_v40  ;;  %753 = vmatprep.mubr.f32.mxu1 %v7140_v0  ;;  %v7160_v0 = vand.u32 4294901760, %v7126_v63  ;;  %v81_v63 = vld [vmem:[%s6866_s1 + $0x1d0] sm:$0xff] }
  0x57   :  { %3837 = vmatpush3.msra.mxu0 %v5107_v41  ;;  %v7141_v41 = vand.u32 4294901760, %v4696_v38  ;;  %757 = vmatmul.mubr.f32.vlgmr.msra.gmra.mxu1 %v7142_v36  ;;  %v7146_v38 = vand.u32 4294901760, %v4777_v6  ;;  %v7153_v6 = vand.u32 4294901760, %v7118_v53  ;;  %v66_v53 = vld [vmem:[%s6866_s1 + $0x158] sm:$0xff]  ;;  %v7167_v36 = vand.u32 4294901760, %v5039_v44  ;;  %v64_v44 = vld [vmem:[%s6866_s1 + $0x148] sm:$0xff] }
  0x58   :  { %649 = vmatmul.mubr.f32.vlgmr.msra.gmra.mxu0 %v5093_v22  ;;  %3876 = vmatprep.subr.mxu0 %v7135_v61  ;;  %v83_v61 = vld [vmem:[%s6866_s1 + $0x1e0] sm:$0xff]  ;;  %v7161_v22 = vand.u32 4294901760, %v4984_v7 }
  0x59   :  { %3877 = vmatpush3.msra.mxu0 %v7136_v30  ;;  %3911 = vmatprep.subr.mxu1 %v4593_v3  ;;  %v7148_v3 = vand.u32 4294901760, %v4805_v50  ;;  %v68_v50 = vld [vmem:[%s6866_s1 + $0x168] sm:$0xff]  ;;  %v5311_v14 = vand.u32 4294901760, %v83_v61 }
  0x5a   :  { %3878 = vmatprep.subr.mxu0 %v7137_v51  ;;  %3912 = vmatpush3.msra.mxu1 %v4595_v4  ;;  %v7149_v4 = vand.u32 4294901760, %v4817_v56  ;;  %v7156_v56 = vand.u32 4294901760, %v7123_v8  ;;  %v5291_v51 = vand.u32 4294901760, %v68_v50  ;;  %v7166_v8 = vand.u32 4294901760, %v5017_v1 }
  0x5b   :  { %3879 = vmatpush3.msra.mxu0 %v7139_v29  ;;  %3913 = vmatprep.subr.mxu1 %v4597_v5  ;;  %v70_v5 = vld [vmem:[%s6866_s1 + $0x178] sm:$0xff]  ;;  %7162 = vst [vmem:[#allocation7_spill] sm:$0xff] %v5311_v14 }
  0x5c   :  { %3880 = vmatprep.subr.mxu0 %v7141_v41  ;;  %3914 = vmatpush3.msra.mxu1 %v4608_v10  ;;  %v7150_v10 = vand.u32 4294901760, %v4834_v24  ;;  %v67_v24 = vld [vmem:[%s6866_s1 + $0x160] sm:$0xff]  ;;  %7159 = vst [vmem:[#allocation6_spill] sm:$0xff] %v5291_v51 }
  0x5d   :  { %3881 = vmatpush3.msra.mxu0 %v7143_v26  ;;  %3915 = vmatprep.subr.mxu1 %v4610_v11  ;;  %v86_v11 = vld [vmem:[%s6866_s1 + $0x1f8] sm:$0xff]  ;;  %v5313_v30 = vand.u32 4294901760, %v67_v24  ;;  %v5343_v26 = vand.u32 4294901760, %v66_v53 }
  0x5e   :  { %3882 = vmatprep.subr.mxu0 %v7144_v28  ;;  %3916 = vmatpush3.msra.mxu1 %v4612_v12  ;;  %v7151_v12 = vand.u32 4294901760, %v4846_v46  ;;  %v7154_v46 = vand.u32 4294901760, %v4913_v32  ;;  %v7169_v28 = vand.u32 4294901760, %v5043_v17 }
  0x5f   :  { %3883 = vmatpush3.msra.mxu0 %v7145_v34  ;;  %3917 = vmatprep.subr.mxu1 %v4628_v18  ;;  %v85_v18 = vld [vmem:[%s6866_s1 + $0x1f0] sm:$0xff]  ;;  %7163 = vst [vmem:[#allocation19_spill] sm:$0xff] %v5313_v30  ;;  %7168 = vst [vmem:[#allocation21_spill] sm:$0xff] %v5343_v26  ;;  %v5351_v34 = vsub.f32 %v67_v24, %v5313_v30 }
  0x60   :  { %3884 = vmatprep.subr.mxu0 %v7146_v38  ;;  %3918 = vmatpush3.msra.mxu1 %v4630_v19  ;;  %v5251_v19 = vand.u32 4294901760, %v70_v5  ;;  %v5264_v47 = vand.u32 4294901760, %v85_v18 }
  0x61   :  { %3885 = vmatpush3.msra.mxu0 %v7147_v43  ;;  %3919 = vmatprep.subr.mxu1 %v4633_v20  ;;  %v5256_v20 = vand.u32 4294901760, %v86_v11  ;;  %v7171_v43 = vand.u32 4294901760, %v5053_v52  ;;  %v7173_v52 = vld [vmem:[#allocation27_spill] sm:$0xff]  ;;  %v6950_v24 = vand.u32 4294901760, %v5351_v34 }
  0x62   :  { %3886 = vmatprep.subr.mxu0 %v7148_v3  ;;  %3920 = vmatpush3.msra.mxu1 %v4655_v25  ;;  %v5266_v25 = vand.u32 4294901760, %v69_v48  ;;  %v5278_v32 = vsub.f32 %v70_v5, %v5251_v19  ;;  %v80_v3 = vld [vmem:[%s6866_s1 + $0x1c8] sm:$0xff] }
  0x63   :  { %3887 = vmatpush3.msra.mxu0 %v7149_v4  ;;  %3921 = vmatprep.subr.mxu1 %v4661_v27  ;;  %v7155_v27 = vand.u32 4294901760, %v7121_v23  ;;  %v5297_v29 = vsub.f32 %v86_v11, %v5256_v20  ;;  %v65_v23 = vld [vmem:[%s6866_s1 + $0x150] sm:$0xff] }
  0x64   :  { %3888 = vmatprep.subr.mxu0 %v7150_v10  ;;  %3922 = vmatpush3.msra.mxu1 %v4684_v33  ;;  %v5280_v33 = vand.u32 4294901760, %v84_v16  ;;  %v5303_v41 = vsub.f32 %v69_v48, %v5266_v25  ;;  %v6953_v7 = vand.u32 4294901760, %v5278_v32  ;;  %v5353_v38 = vand.u32 4294901760, %v65_v23  ;;  %v7176_v48 = vld [vmem:[#allocation30_spill] sm:$0xff] }
  0x65   :  { %3889 = vmatpush3.msra.mxu0 %v7151_v12  ;;  %3923 = vmatprep.subr.mxu1 %v4690_v35  ;;  %v7158_v35 = vand.u32 4294901760, %v4955_v45  ;;  %v5306_v45 = vsub.f32 %v85_v18, %v5264_v47  ;;  %v130_v10 = vcombine.high %v7173_v52, %v7173_v52  ;;  %v7175_v18 = vand.u32 4294901760, %v5067_v37  ;;  %v79_v37 = vld [vmem:[%s6866_s1 + $0x1c0] sm:$0xff] }
  0x66   :  { %3890 = vmatprep.subr.mxu0 %v7152_v62  ;;  %3924 = vmatpush3.msra.mxu1 %v4699_v39  ;;  %7157 = vst [vmem:[#allocation16_spill] sm:$0xff] %v5280_v33  ;;  %v82_v39 = vld [vmem:[%s6866_s1 + $0x1d8] sm:$0xff]  ;;  %7170 = vst [vmem:[#allocation9_spill] sm:$0xff] %v5353_v38  ;;  %v5367_v17 = vsub.f32 %v5278_v32, %v6953_v7  ;;  %v5393_v62 = vsub.f32 %v66_v53, %v5343_v26 }
  0x67   :  { %3891 = vmatpush3.msra.mxu0 %v7153_v6  ;;  %3925 = vmatprep.subr.mxu1 %v7119_v59  ;;  %v7164_v59 = vand.u32 4294901760, %v5006_v13  ;;  %v5334_v13 = vsub.f32 %v68_v50, %v5291_v51  ;;  %v6952_v1 = vand.u32 4294901760, %v5306_v45  ;;  %v5405_v6 = vand.u32 4294901760, %v64_v44  ;;  %v7179_v50 = vld [vmem:[#allocation15_spill] sm:$0xff] }
  0x68   :  { %3892 = vmatprep.subr.mxu0 %v7154_v46  ;;  %3926 = vmatpush3.msra.mxu1 %v7120_v54  ;;  %v5321_v54 = vand.u32 4294901760, %v82_v39  ;;  %v7178_v46 = vand.u32 4294901760, %v5078_v2  ;;  %v7182_v2 = vld [vmem:[#allocation17_spill] sm:$0xff]  ;;  %v5438_v53 = vld [vmem:[%s6866_s1 + $0x1b8] sm:$0xff] }
  0x69   :  { %3893 = vmatpush3.msra.mxu0 %v7155_v27  ;;  %3927 = vmatprep.subr.mxu1 %v7122_v42  ;;  %v5328_v42 = vsub.f32 %v84_v16, %v5280_v33  ;;  %v6947_v12 = vand.u32 4294901760, %v5334_v13  ;;  %7177 = vst [vmem:[#allocation24_spill] sm:$0xff] %v5405_v6  ;;  %v63_v16 = vld [vmem:[%s6866_s1 + $0x140] sm:$0xff]  ;;  %v5417_v27 = vsub.f32 %v65_v23, %v5353_v38 }
  0x6a   :  { %3894 = vmatprep.subr.mxu0 %v7156_v56  ;;  %3928 = vmatpush3.msra.mxu1 %v7124_v31  ;;  %7165 = vst [vmem:[#allocation8_spill] sm:$0xff] %v5321_v54  ;;  %v6954_v31 = vand.u32 4294901760, %v5297_v29  ;;  %v5376_v5 = vsub.f32 %v82_v39, %v5321_v54  ;;  %v5419_v56 = vand.u32 4294901760, %v80_v3  ;;  %v7181_v39 = vand.u32 4294901760, %v5103_v40  ;;  %v7183_v40 = vld [vmem:[#allocation31_spill] sm:$0xff] }
  0x6b   :  { %3895 = vmatpush3.msra.mxu0 %v7158_v35  ;;  %3929 = vmatprep.subr.mxu1 %v7125_v58  ;;  %v6951_v58 = vand.u32 4294901760, %v5303_v41  ;;  %v6948_v4 = vand.u32 4294901760, %v5328_v42  ;;  %v62_v35 = vld [vmem:[%s6866_s1 + $0x138] sm:$0xff] }
  0x6c   :  { %3896 = vmatprep.subr.mxu0 %v7160_v0  ;;  %3930 = vmatpush3.msra.mxu1 %v7127_v9  ;;  %v5359_v9 = vsub.f32 %v83_v61, %v5311_v14  ;;  %v5386_v11 = vsub.f32 %v5297_v29, %v6954_v31  ;;  %7180 = vst [vmem:[#allocation11_spill] sm:$0xff] %v5419_v56  ;;  %v7194_v31 = vld [vmem:[#allocation23_spill] sm:$0xff] }
  0x6d   :  { %3897 = vmatpush3.msra.mxu0 %v7161_v22  ;;  %3931 = vmatprep.subr.mxu1 %v7128_v49  ;;  %v5369_v49 = vand.u32 4294901760, %v81_v63  ;;  %v5433_v22 = vsub.f32 %v5328_v42, %v6948_v4  ;;  %v77_v4 = vld [vmem:[%s6866_s1 + $0x1b0] sm:$0xff]  ;;  %v5498_v7 = vsub.f32 %v80_v3, %v5419_v56  ;;  %v7197_v3 = vld [vmem:[#allocation25_spill] sm:$0xff] }
  0x6e   :  { %3898 = vmatprep.subr.mxu0 %v7164_v59  ;;  %3932 = vmatpush3.msra.mxu1 %v7129_v15  ;;  %v7174_v15 = vand.u32 4294901760, %v5060_v55  ;;  %v5398_v55 = vsub.f32 %v5306_v45, %v6952_v1  ;;  %v6949_v61 = vand.u32 4294901760, %v5359_v9  ;;  %v6955_v59 = vand.u32 4294901760, %v5376_v5  ;;  %v61_v1 = vld [vmem:[%s6866_s1 + $0x130] sm:$0xff] }
  0x6f   :  { %3899 = vmatpush3.msra.mxu0 %v7166_v8  ;;  %7172 = vst [vmem:[#allocation10_spill] sm:$0xff] %v5369_v49  ;;  %3933 = vmatprep.subr.mxu1 %v7130_v21  ;;  %v5403_v21 = vsub.f32 %v5303_v41, %v6951_v58  ;;  %v5442_v23 = vsub.f32 %v81_v63, %v5369_v49  ;;  %v7184_v8 = vand.u32 4294901760, %v7183_v40  ;;  %v7191_v40 = vld [vmem:[#allocation20_spill] sm:$0xff]  ;;  %v5544_v58 = vand.u32 4294901760, %v61_v1 }
  0x70   :  { %3900 = vmatprep.subr.mxu0 %v7167_v36  ;;  %923 = vmatprep.mubr.f32.mxu0 %v7176_v48  ;;  %v7185_v36 = vld [vmem:[#allocation18_spill] sm:$0xff] }
  0x71   :  { %3901 = vmatpush3.msra.mxu0 %v7169_v28  ;;  %3934 = vmatpush3.msra.mxu1 %v7179_v50  ;;  %v5510_v50 = vld [vmem:[%s6866_s1 + $0x1a8] sm:$0xff]  ;;  %v7200_v28 = vld [vmem:[#allocation28_spill] sm:$0xff] }
  0x72   :  { %3902 = vmatprep.subr.mxu0 %v7171_v43  ;;  %3935 = vmatprep.subr.mxu1 %v7182_v2  ;;  %v5451_v43 = vsub.f32 %v5334_v13, %v6947_v12  ;;  %v5464_v2 = vand.u32 4294901760, %v62_v35  ;;  %v5479_v12 = vand.u32 4294901760, %v5438_v53 }
  0x73   :  { %3903 = vmatpush3.msra.mxu0 %v7174_v15  ;;  %3936 = vmatpush3.msra.mxu1 %v7185_v36  ;;  %v5453_v15 = vand.u32 4294901760, %v79_v37  ;;  %v5476_v36 = vsub.f32 %v5351_v34, %v6950_v24  ;;  %v5491_v24 = vsub.f32 %v5376_v5, %v6955_v59  ;;  %v5555_v59 = vand.u32 4294901760, %v5510_v50 }
  0x74   :  { %3904 = vmatprep.subr.mxu0 %v7175_v18  ;;  %v5455_v18 = vand.u32 4294901760, %v63_v16  ;;  %7190 = vst [vmem:[#allocation5_spill] sm:$0xff] %v5464_v2  ;;  %3937 = vmatprep.subr.mxu1 %v7191_v40  ;;  %7192 = vst [vmem:[#allocation26_spill] sm:$0xff] %v5479_v12  ;;  %v7193_v40 = vld [vmem:[#allocation22_spill] sm:$0xff] }
  0x75   :  { %3905 = vmatpush3.msra.mxu0 %v7178_v46  ;;  %7186 = vst [vmem:[#allocation12_spill] sm:$0xff] %v5453_v15  ;;  %v7188_v46 = vld [vmem:[#allocation29_spill] sm:$0xff]  ;;  %3938 = vmatpush3.msra.mxu1 %v7193_v40  ;;  %v5513_v63 = vsub.f32 %v79_v37, %v5453_v15  ;;  %v5520_v40 = vand.u32 4294901760, %v77_v4  ;;  %7202 = vst [vmem:[#allocation31_spill] sm:$0xff] %v5555_v59 }
  0x76   :  { %3906 = vmatprep.subr.mxu0 %v7181_v39  ;;  %7187 = vst [vmem:[#allocation13_spill] sm:$0xff] %v5455_v18  ;;  %v5462_v39 = vsub.f32 %v64_v44, %v5405_v6  ;;  %v6956_v44 = vand.u32 4294901760, %v5393_v62  ;;  %3939 = vmatprep.subr.mxu1 %v7194_v31  ;;  %v5518_v31 = vsub.f32 %v62_v35, %v5464_v2  ;;  %v59_v37 = vld [vmem:[%s6866_s1 + $0x120] sm:$0xff]  ;;  %v58_v35 = vld [vmem:[%s6866_s1 + $0x118] sm:$0xff] }
  0x77   :  { %3907 = vmatpush3.msra.mxu0 %v7184_v8  ;;  %v5471_v8 = vsub.f32 %v5359_v9, %v6949_v61  ;;  %v5504_v61 = vsub.f32 %v63_v16, %v5455_v18  ;;  %7196 = vst [vmem:[#allocation30_spill] sm:$0xff] %v5513_v63  ;;  %3940 = vmatpush3.msra.mxu1 %v7197_v3  ;;  %7199 = vst [vmem:[#allocation17_spill] sm:$0xff] %v5520_v40  ;;  %v60_v16 = vld [vmem:[%s6866_s1 + $0x128] sm:$0xff] }
  0x78   :  { %925 = vmatmul.mubr.f32.vlgmr.msra.gmra.mxu0 %v7188_v46  ;;  %3946 = vmatprep.subr.mxu0 %v5256_v20  ;;  %7189 = vst [vmem:[#allocation14_spill] sm:$0xff] %v5462_v39  ;;  %7198 = vst [vmem:[#allocation15_spill] sm:$0xff] %v5518_v31  ;;  %v5533_v3 = vrot.slane %v130_v10, %v7200_v28  ;;  %v5542_v0 = vsub.f32 %v5393_v62, %v6956_v44  ;;  %v7201_v10 = vand.u32 4294901760, %v5442_v23  ;;  %v75_v44 = vld [vmem:[%s6866_s1 + $0x1a0] sm:$0xff] }
  0x79   :  { %3947 = vmatpush3.msra.mxu0 %v5251_v19  ;;  %7195 = vst [vmem:[#allocation27_spill] sm:$0xff] %v5504_v61  ;;  %3941 = vmatprep.subr.mxu1 %v4997_v57  ;;  %v5586_v28 = vsub.f32 %v5438_v53, %v5479_v12  ;;  %v7208_v53 = vand.u32 4294901760, %v5367_v17  ;;  %v7211_v17 = vand.u32 4294901760, %v5398_v55  ;;  %v7213_v55 = vand.u32 4294901760, %v5403_v21 }
  0x7a   :  { %3948 = vmatprep.subr.mxu0 %v5264_v47  ;;  %3942 = vmatpush3.msra.mxu1 %v7138_v60  ;;  %v5552_v57 = vsub.f32 %v5442_v23, %v7201_v10  ;;  %v7203_v60 = vand.u32 4294901760, %v5417_v27  ;;  %v5568_v10 = vand.u32 4294901760, %v60_v16  ;;  %v7216_v21 = vand.u32 4294901760, %v5433_v22 }
  0x7b   :  { %3949 = vmatpush3.msra.mxu0 %v5266_v25  ;;  %1027 = vmatprep.mubr.f32.mxu1 %v7176_v48  ;;  %v7206_v48 = vand.u32 4294901760, %v5462_v39  ;;  %v5668_v22 = vand.u32 4294901760, %v5533_v3 }
  0x7c   :  { %3950 = vmatprep.subr.mxu0 %v5280_v33  ;;  %v5566_v52 = vsub.f32 %v5417_v27, %v7203_v60  ;;  %7204 = vst [vmem:[#allocation18_spill] sm:$0xff] %v5568_v10  ;;  %1029 = vmatmul.mubr.f32.vlgmr.msra.gmra.mxu1 %v7188_v46  ;;  %v7207_v33 = vand.u32 4294901760, %v5386_v11  ;;  %v1179_v46 = vand.u32 4294901760, %v5542_v0  ;;  %v5612_v0 = vand.u32 4294901760, %v58_v35 }
  0x7d   :  { %3951 = vmatpush3.msra.mxu0 %v5291_v51  ;;  %v146_v51 = vcombine.high %v5533_v3, %v5533_v3  ;;  %v5615_v60 = vsub.f32 %v77_v4, %v5520_v40  ;;  %v57_v4 = vld [vmem:[%s6866_s1 + $0x110] sm:$0xff]  ;;  %7219 = vst [vmem:[#allocation25_spill] sm:$0xff] %v5668_v22 }
  0x7e   :  { %3952 = vmatprep.subr.mxu0 %v5311_v14  ;;  %v5571_v14 = vand.u32 4294901760, %v59_v37  ;;  %3981 = vmatprep.subr.mxu1 %v7207_v33  ;;  %v7209_v33 = vand.u32 4294901760, %v5498_v7  ;;  %7210 = vst [vmem:[#allocation20_spill] sm:$0xff] %v5612_v0 }
  0x7f   :  { %3953 = vmatpush3.msra.mxu0 %v5313_v30  ;;  %v5581_v30 = vsub.f32 %v5462_v39, %v7206_v48  ;;  %v5597_v48 = vand.u32 4294901760, %v75_v44  ;;  %3982 = vmatpush3.msra.mxu1 %v7208_v53  ;;  %v1298_v39 = vand.u32 4294901760, %v5552_v57  ;;  %v1186_v57 = vand.u32 4294901760, %v5566_v52 }
  0x80   :  { %7205 = vst [vmem:[#allocation29_spill] sm:$0xff] %v5571_v14  ;;  %3954 = vmatprep.subr.mxu0 %v5321_v54  ;;  %v5595_v54 = vsub.f32 %v61_v1, %v5544_v58  ;;  %v5607_v11 = vsub.f32 %v5498_v7, %v7209_v33  ;;  %v74_v1 = vld [vmem:[%s6866_s1 + $0x198] sm:$0xff]  ;;  %3983 = vmatprep.subr.mxu1 %v7211_v17  ;;  %v7212_v33 = vand.u32 4294901760, %v5513_v63  ;;  %v7214_v52 = vand.u32 4294901760, %v5504_v61 }
  0x81   :  { %3955 = vmatpush3.msra.mxu0 %v5343_v26  ;;  %v5622_v53 = vsub.f32 %v60_v16, %v5568_v10  ;;  %v5630_v26 = vsub.f32 %v59_v37, %v5571_v14  ;;  %3984 = vmatpush3.msra.mxu1 %v7213_v55  ;;  %v73_v37 = vld [vmem:[%s6866_s1 + $0x190] sm:$0xff]  ;;  %v5653_v55 = vand.u32 4294901760, %v74_v1  ;;  %v7218_v16 = vand.u32 4294901760, %v5518_v31 }
  0x82   :  { %3956 = vmatprep.subr.mxu0 %v5369_v49  ;;  %v5627_v49 = vsub.f32 %v5513_v63, %v7212_v33  ;;  %v5642_v17 = vsub.f32 %v5504_v61, %v7214_v52  ;;  %3985 = vmatprep.subr.mxu1 %v7216_v21  ;;  %v72_v33 = vld [vmem:[%s6866_s1 + $0x188] sm:$0xff]  ;;  %v7220_v21 = vand.u32 4294901760, %v5451_v43  ;;  %v5678_v61 = vand.u32 4294901760, %v57_v4 }
  0x83   :  { %3957 = vmatpush3.msra.mxu0 %v5353_v38  ;;  %v5648_v38 = vand.u32 4294901760, %v146_v51  ;;  %7217 = vst [vmem:[#allocation23_spill] sm:$0xff] %v5653_v55  ;;  %v5658_v52 = vsub.f32 %v5518_v31, %v7218_v16  ;;  %v5675_v16 = vsub.f32 %v58_v35, %v5612_v0  ;;  %v5684_v43 = vand.u32 4294901760, %v73_v37  ;;  %v56_v35 = vld [vmem:[%s6866_s1 + $0x108] sm:$0xff] }
  0x84   :  { %3958 = vmatprep.subr.mxu0 %v5419_v56  ;;  %v5665_v56 = vsub.f32 %v5510_v50, %v5555_v59  ;;  %3986 = vmatpush3.msra.mxu1 %v7220_v21  ;;  %v7221_v50 = vand.u32 4294901760, %v5471_v8  ;;  %v1312_v63 = vand.u32 4294901760, %v5627_v49  ;;  %v7223_v31 = vand.u32 4294901760, %v5476_v36  ;;  %v71_v21 = vld [vmem:[%s6866_s1 + $0x180] sm:$0xff] }
  0x85   :  { %7215 = vst [vmem:[#allocation22_spill] sm:$0xff] %v5648_v38  ;;  %3959 = vmatpush3.msra.mxu0 %v5405_v6  ;;  %v1305_v6 = vand.u32 4294901760, %v5607_v11  ;;  %7222 = vst [vmem:[#allocation32_spill] sm:$0xff] %v5684_v43  ;;  %v5691_v11 = vsub.f32 %v75_v44, %v5597_v48  ;;  %v1200_v8 = vand.u32 4294901760, %v5642_v17  ;;  %v7224_v49 = vand.u32 4294901760, %v5586_v28  ;;  %1371 = vmatprep.mubr.f32.mxu1 %v5648_v38 }
  0x86   :  { %3960 = vmatprep.subr.mxu0 %v5453_v15  ;;  %3987 = vmatprep.subr.mxu1 %v7221_v50  ;;  %v5706_v44 = vsub.f32 %v146_v51, %v5648_v38  ;;  %v7225_v36 = vand.u32 4294901760, %v5491_v24  ;;  %v5721_v51 = vsub.f32 %v74_v1, %v5653_v55  ;;  %v7226_v24 = vand.u32 4294901760, %v5615_v60 }
  0x87   :  { %3961 = vmatpush3.msra.mxu0 %v5455_v18  ;;  %3988 = vmatpush3.msra.mxu1 %v7223_v31  ;;  %v1318_v50 = vsub.f32 %v5586_v28, %v7224_v49  ;;  %v5700_v18 = vand.u32 4294901760, %v72_v33  ;;  %v1207_v31 = vand.u32 4294901760, %v5658_v52  ;;  %v55_v49 = vld [vmem:[%s6866_s1 + $0x100] sm:$0xff]  ;;  %v5730_v17 = vand.u32 4294901760, %v56_v35 }
  0x88   :  { %3962 = vmatprep.subr.mxu0 %v5479_v12  ;;  %3989 = vmatprep.subr.mxu1 %v7225_v36  ;;  %v5718_v12 = vsub.f32 %v5533_v3, %v5668_v22  ;;  %v1325_v52 = vsub.f32 %v5615_v60, %v7226_v24  ;;  %v5728_v36 = vsub.f32 %v57_v4, %v5678_v61  ;;  %v7227_v3 = vand.u32 4294901760, %v5595_v54 }
  0x89   :  { %3963 = vmatpush3.msra.mxu0 %v5464_v2  ;;  %3990 = vmatpush3.msra.mxu1 %v1179_v46  ;;  %v5737_v1 = vand.u32 4294901760, %v71_v21  ;;  %v5741_v24 = vsub.f32 %v73_v37, %v5684_v43  ;;  %v1319_v4 = vand.u32 4294901760, %v1318_v50  ;;  %v5744_v15 = vand.u32 4294901760, %v55_v49 }
  0x8a   :  { %3964 = vmatprep.subr.mxu0 %v5520_v40  ;;  %3991 = vmatprep.subr.mxu1 %v1298_v39  ;;  %v1213_v46 = vsub.f32 %v5595_v54, %v7227_v3  ;;  %v7228_v3 = vand.u32 4294901760, %v5665_v56  ;;  %v7229_v50 = vand.u32 4294901760, %v5581_v30  ;;  %v1326_v2 = vand.u32 4294901760, %v1325_v52  ;;  %v7265_v38 = vld [vmem:[#allocation23_spill] sm:$0xff] }
  0x8b   :  { %3965 = vmatpush3.msra.mxu0 %v5544_v58  ;;  %3992 = vmatpush3.msra.mxu1 %v1186_v57  ;;  %v7231_v39 = vand.u32 4294901760, %v5622_v53  ;;  %v7232_v57 = vand.u32 4294901760, %v5691_v11  ;;  %v5773_v52 = vsub.f32 %v71_v21, %v5737_v1 }
  0x8c   :  { %3966 = vmatprep.subr.mxu0 %v5555_v59  ;;  %3993 = vmatprep.subr.mxu1 %v1305_v6  ;;  %v1332_v40 = vsub.f32 %v5665_v56, %v7228_v3  ;;  %v5755_v59 = vsub.f32 %v72_v33, %v5700_v18  ;;  %v5761_v6 = vsub.f32 %v56_v35, %v5730_v17  ;;  %v1214_v33 = vand.u32 4294901760, %v1213_v46 }
  0x8d   :  { %3967 = vmatpush3.msra.mxu0 %v5568_v10  ;;  %3994 = vmatpush3.msra.mxu1 %v7229_v50  ;;  %v1220_v3 = vsub.f32 %v5622_v53, %v7231_v39  ;;  %v1339_v30 = vsub.f32 %v5691_v11, %v7232_v57  ;;  %7233 = vst [vmem:[#allocation34_spill] sm:$0xff] %v5773_v52  ;;  %v7236_v46 = vand.u32 4294901760, %v5630_v26  ;;  %v7239_v57 = vand.u32 4294901760, %v5675_v16 }
  0x8e   :  { %3968 = vmatprep.subr.mxu0 %v5597_v48  ;;  %7230 = vst [vmem:[#allocation33_spill] sm:$0xff] %v5761_v6  ;;  %3995 = vmatprep.subr.mxu1 %v1312_v63  ;;  %v5777_v35 = vsub.f32 %v55_v49, %v5744_v15  ;;  %v7235_v63 = vand.u32 4294901760, %v5706_v44  ;;  %v1333_v21 = vand.u32 4294901760, %v1332_v40  ;;  %v7238_v49 = vand.u32 4294901760, %v5721_v51 }
  0x8f   :  { %3969 = vmatpush3.msra.mxu0 %v5571_v14  ;;  %3996 = vmatpush3.msra.mxu1 %v1200_v8  ;;  %v1227_v37 = vsub.f32 %v5630_v26, %v7236_v46  ;;  %v7237_v8 = vand.u32 4294901760, %v5718_v12  ;;  %v1221_v46 = vand.u32 4294901760, %v1220_v3 }
  0x90   :  { %3970 = vmatprep.subr.mxu0 %v5653_v55  ;;  %7234 = vst [vmem:[#allocation35_spill] sm:$0xff] %v5777_v35  ;;  %v1133_v39 = vsub.f32 %v5706_v44, %v7235_v63  ;;  %3997 = vmatprep.subr.mxu1 %v1319_v4  ;;  %v1346_v55 = vsub.f32 %v5721_v51, %v7238_v49 }
  0x91   :  { %3971 = vmatpush3.msra.mxu0 %v5612_v0  ;;  %v1139_v50 = vsub.f32 %v5718_v12, %v7237_v8  ;;  %3998 = vmatpush3.msra.mxu1 %v1207_v31  ;;  %v1234_v4 = vsub.f32 %v5675_v16, %v7239_v57  ;;  %v1340_v8 = vand.u32 4294901760, %v1339_v30  ;;  %v7240_v0 = vand.u32 4294901760, %v5741_v24 }
  0x92   :  { %3972 = vmatprep.subr.mxu0 %v5684_v43  ;;  %3999 = vmatprep.subr.mxu1 %v1326_v2  ;;  %v1134_v31 = vand.u32 4294901760, %v1133_v39  ;;  %v1228_v3 = vand.u32 4294901760, %v1227_v37  ;;  %v7241_v43 = vand.u32 4294901760, %v5728_v36  ;;  %v7003_v2 = vand.u32 4294901760, %v5777_v35 }
  0x93   :  { %3973 = vmatpush3.msra.mxu0 %v5678_v61  ;;  %v1353_v49 = vsub.f32 %v5741_v24, %v7240_v0  ;;  %4000 = vmatpush3.msra.mxu1 %v1214_v33  ;;  %v1140_v30 = vand.u32 4294901760, %v1139_v50  ;;  %v1347_v40 = vand.u32 4294901760, %v1346_v55  ;;  %v7242_v0 = vand.u32 4294901760, %v5755_v59 }
  0x94   :  { %3974 = vmatprep.subr.mxu0 %v5700_v18  ;;  %v1241_v57 = vsub.f32 %v5728_v36, %v7241_v43  ;;  %4001 = vmatprep.subr.mxu1 %v1333_v21  ;;  %v1235_v33 = vand.u32 4294901760, %v1234_v4  ;;  %v7243_v37 = vand.u32 4294901760, %v5761_v6  ;;  %v7244_v21 = vand.u32 4294901760, %v5773_v52 }
  0x95   :  { %3975 = vmatpush3.msra.mxu0 %v5730_v17  ;;  %v1360_v63 = vsub.f32 %v5755_v59, %v7242_v0  ;;  %4002 = vmatpush3.msra.mxu1 %v1221_v46  ;;  %v1354_v43 = vand.u32 4294901760, %v1353_v49  ;;  %v1255_v46 = vsub.f32 %v5777_v35, %v7003_v2  ;;  %v7250_v0 = vld [vmem:[#allocation27_spill] sm:$0xff]  ;;  %v7263_v2 = vld [vmem:[#allocation17_spill] sm:$0xff] }
  0x96   :  { %3976 = vmatprep.subr.mxu0 %v5737_v1  ;;  %v1248_v39 = vsub.f32 %v5761_v6, %v7243_v37  ;;  %4003 = vmatprep.subr.mxu1 %v1340_v8  ;;  %v1367_v55 = vsub.f32 %v5773_v52, %v7244_v21  ;;  %v1242_v50 = vand.u32 4294901760, %v1241_v57  ;;  %v7248_v57 = vld [vmem:[#allocation30_spill] sm:$0xff]  ;;  %v7252_v37 = vld [vmem:[#allocation8_spill] sm:$0xff] }
  0x97   :  { %3977 = vmatpush3.msra.mxu0 %v5744_v15  ;;  %1135 = vmatprep.mubr.f32.mxu0 %v1134_v31  ;;  %v1361_v4 = vand.u32 4294901760, %v1360_v63  ;;  %v1256_v31 = vand.u32 4294901760, %v1255_v46  ;;  %v7245_v63 = vld [vmem:[#allocation16_spill] sm:$0xff]  ;;  %v7255_v21 = vld [vmem:[#allocation10_spill] sm:$0xff] }
  0x98   :  { %4004 = vmatpush3.msra.mxu1 %v1228_v3  ;;  %1141 = vmatmul.mubr.f32.vlgmr.msra.gmra.mxu0 %v1140_v30  ;;  %v1249_v8 = vand.u32 4294901760, %v1248_v39  ;;  %v1368_v49 = vand.u32 4294901760, %v1367_v55  ;;  %v7247_v3 = vld [vmem:[#allocation6_spill] sm:$0xff]  ;;  %v7249_v30 = vld [vmem:[#allocation7_spill] sm:$0xff]  ;;  %v7256_v55 = vld [vmem:[#allocation9_spill] sm:$0xff] }
  0x99   :  { %4005 = vmatprep.subr.mxu1 %v1347_v40  ;;  %4016 = vmatprep.subr.mxu0 %v5297_v29  ;;  %v7246_v40 = vld [vmem:[#allocation14_spill] sm:$0xff]  ;;  %v7253_v39 = vld [vmem:[#allocation15_spill] sm:$0xff]  ;;  %v7258_v46 = vld [vmem:[#allocation24_spill] sm:$0xff] }
  0x9a   :  { %4006 = vmatpush3.msra.mxu1 %v1235_v33  ;;  %4017 = vmatpush3.msra.mxu0 %v5278_v32  ;;  %v7251_v33 = vld [vmem:[#allocation19_spill] sm:$0xff] }
  0x9b   :  { %4007 = vmatprep.subr.mxu1 %v1354_v43  ;;  %4018 = vmatprep.subr.mxu0 %v5306_v45  ;;  %v7254_v43 = vld [vmem:[#allocation21_spill] sm:$0xff] }
  0x9c   :  { %4008 = vmatpush3.msra.mxu1 %v1242_v50  ;;  %4019 = vmatpush3.msra.mxu0 %v5303_v41  ;;  %v7257_v50 = vld [vmem:[#allocation11_spill] sm:$0xff] }
  0x9d   :  { %4009 = vmatprep.subr.mxu1 %v1361_v4  ;;  %4020 = vmatprep.subr.mxu0 %v5328_v42  ;;  %v7259_v4 = vld [vmem:[#allocation12_spill] sm:$0xff] }
  0x9e   :  { %4010 = vmatpush3.msra.mxu1 %v1249_v8  ;;  %4021 = vmatpush3.msra.mxu0 %v5334_v13  ;;  %v7260_v8 = vld [vmem:[#allocation13_spill] sm:$0xff] }
  0x9f   :  { %4011 = vmatprep.subr.mxu1 %v1368_v49  ;;  %4022 = vmatprep.subr.mxu0 %v5359_v9  ;;  %v7261_v49 = vld [vmem:[#allocation26_spill] sm:$0xff] }
  0xa0   :  { %4012 = vmatpush3.msra.mxu1 %v1256_v31  ;;  %4023 = vmatpush3.msra.mxu0 %v5351_v34  ;;  %v7262_v31 = vld [vmem:[#allocation5_spill] sm:$0xff] }
  0xa1   :  { %1373 = vmatmul.mubr.f32.vlgmr.msra.gmra.mxu1 %v5668_v22  ;;  %4024 = vmatprep.subr.mxu0 %v5376_v5  ;;  %v7264_v22 = vld [vmem:[#allocation31_spill] sm:$0xff] }
  0xa2   :  { %4051 = vmatprep.subr.mxu1 %v5256_v20  ;;  %4025 = vmatpush3.msra.mxu0 %v5393_v62 }
  0xa3   :  { %4052 = vmatpush3.msra.mxu1 %v5251_v19  ;;  %4026 = vmatprep.subr.mxu0 %v5442_v23 }
  0xa4   :  { %4053 = vmatprep.subr.mxu1 %v5264_v47  ;;  %4027 = vmatpush3.msra.mxu0 %v5417_v27 }
  0xa5   :  { %4054 = vmatpush3.msra.mxu1 %v5266_v25  ;;  %4028 = vmatprep.subr.mxu0 %v5498_v7 }
  0xa6   :  { %4055 = vmatprep.subr.mxu1 %v7245_v63  ;;  %4029 = vmatpush3.msra.mxu0 %v7246_v40 }
  0xa7   :  { %4056 = vmatpush3.msra.mxu1 %v7247_v3  ;;  %4030 = vmatprep.subr.mxu0 %v7248_v57 }
  0xa8   :  { %4057 = vmatprep.subr.mxu1 %v7249_v30  ;;  %4031 = vmatpush3.msra.mxu0 %v7250_v0 }
  0xa9   :  { %4058 = vmatpush3.msra.mxu1 %v7251_v33  ;;  %4032 = vmatprep.subr.mxu0 %v5586_v28 }
  0xaa   :  { %4059 = vmatprep.subr.mxu1 %v7252_v37  ;;  %4033 = vmatpush3.msra.mxu0 %v7253_v39 }
  0xab   :  { %4060 = vmatpush3.msra.mxu1 %v7254_v43  ;;  %4034 = vmatprep.subr.mxu0 %v5615_v60 }
  0xac   :  { %4061 = vmatprep.subr.mxu1 %v7255_v21  ;;  %4035 = vmatpush3.msra.mxu0 %v5595_v54 }
  0xad   :  { %4062 = vmatpush3.msra.mxu1 %v7256_v55  ;;  %4036 = vmatprep.subr.mxu0 %v5665_v56 }
  0xae   :  { %4063 = vmatprep.subr.mxu1 %v7257_v50  ;;  %4037 = vmatpush3.msra.mxu0 %v5622_v53 }
  0xaf   :  { %4064 = vmatpush3.msra.mxu1 %v7258_v46  ;;  %4038 = vmatprep.subr.mxu0 %v5691_v11 }
  0xb0   :  { %4065 = vmatprep.subr.mxu1 %v7259_v4  ;;  %4039 = vmatpush3.msra.mxu0 %v5630_v26 }
  0xb1   :  { %4066 = vmatpush3.msra.mxu1 %v7260_v8  ;;  %4040 = vmatprep.subr.mxu0 %v5721_v51 }
  0xb2   :  { %4067 = vmatprep.subr.mxu1 %v7261_v49  ;;  %4041 = vmatpush3.msra.mxu0 %v5675_v16 }
  0xb3   :  { %4068 = vmatpush3.msra.mxu1 %v7262_v31  ;;  %4042 = vmatprep.subr.mxu0 %v5741_v24 }
  0xb4   :  { %4069 = vmatprep.subr.mxu1 %v7263_v2  ;;  %4043 = vmatpush3.msra.mxu0 %v5728_v36 }
  0xb5   :  { %4070 = vmatpush3.msra.mxu1 %v5544_v58  ;;  %4044 = vmatprep.subr.mxu0 %v5755_v59 }
  0xb6   :  { %4071 = vmatprep.subr.mxu1 %v7264_v22  ;;  %4045 = vmatpush3.msra.mxu0 %v5761_v6  ;;  %v7266_v22 = vand.u32 4294901760, %v5297_v29  ;;  %v7267_v6 = vld [vmem:[#allocation20_spill] sm:$0xff]  ;;  %v7272_v29 = vand.u32 4294901760, %v5328_v42  ;;  %v7277_v42 = vand.u32 4294901760, %v5718_v12 }
  0xb7   :  { %4072 = vmatpush3.msra.mxu1 %v5568_v10  ;;  %4046 = vmatprep.subr.mxu0 %v5773_v52  ;;  %v7268_v10 = vand.u32 4294901760, %v5278_v32  ;;  %v7269_v52 = vld [vmem:[#allocation32_spill] sm:$0xff]  ;;  %v7273_v32 = vand.u32 4294901760, %v5334_v13  ;;  %v7279_v13 = vand.u32 4294901760, %v5393_v62  ;;  %v117_v62 = vld [vmem:[%s6866_s1 + $0x2f0] sm:$0xff] }
  0xb8   :  { %4073 = vmatprep.subr.mxu1 %v5597_v48  ;;  %4047 = vmatpush3.msra.mxu0 %v5777_v35  ;;  %v7270_v35 = vand.u32 4294901760, %v5306_v45  ;;  %v7274_v45 = vand.u32 4294901760, %v5359_v9  ;;  %v7280_v9 = vand.u32 4294901760, %v5442_v23  ;;  %v7287_v23 = vand.u32 4294901760, %v7253_v39 }
  0xb9   :  { %1508 = vmatprep.mubr.f32.mxu0 %v5706_v44  ;;  %4074 = vmatpush3.msra.mxu1 %v5571_v14  ;;  %v7271_v14 = vand.u32 4294901760, %v5303_v41  ;;  %v7275_v41 = vand.u32 4294901760, %v5706_v44  ;;  %v116_v44 = vld [vmem:[%s6866_s1 + $0x2e8] sm:$0xff]  ;;  %v7294_v39 = vand.u32 4294901760, %v5691_v11  ;;  %v114_v11 = vld [vmem:[%s6866_s1 + $0x2d8] sm:$0xff] }
  0xba   :  { %1511 = vmatmul.mubr.f32.vlgmr.msra.gmra.mxu0 %v5718_v12  ;;  %4075 = vmatprep.subr.mxu1 %v7265_v38  ;;  %v102_v12 = vld [vmem:[%s6866_s1 + $0x278] sm:$0xff] }
  0xbb   :  { %4086 = vmatprep.subr.mxu0 %v7266_v22  ;;  %4076 = vmatpush3.msra.mxu1 %v7267_v6  ;;  %v101_v22 = vld [vmem:[%s6866_s1 + $0x270] sm:$0xff] }
  0xbc   :  { %4087 = vmatpush3.msra.mxu0 %v7268_v10  ;;  %4077 = vmatprep.subr.mxu1 %v7269_v52  ;;  %v7278_v10 = vand.u32 4294901760, %v5376_v5  ;;  %v7282_v5 = vand.u32 4294901760, %v5498_v7 }
  0xbd   :  { %4088 = vmatprep.subr.mxu0 %v7270_v35  ;;  %4078 = vmatpush3.msra.mxu1 %v5678_v61  ;;  %v7288_v35 = vand.u32 4294901760, %v5615_v60  ;;  %v7290_v60 = vand.u32 4294901760, %v5665_v56  ;;  %v99_v56 = vld [vmem:[%s6866_s1 + $0x260] sm:$0xff] }
  0xbe   :  { %4089 = vmatpush3.msra.mxu0 %v7271_v14  ;;  %4079 = vmatprep.subr.mxu1 %v5700_v18  ;;  %v7276_v14 = vand.u32 4294901760, %v5351_v34  ;;  %v7281_v34 = vand.u32 4294901760, %v5417_v27  ;;  %v7286_v27 = vand.u32 4294901760, %v5586_v28  ;;  %v5961_v28 = vand.u32 4294901760, %v102_v12 }
  0xbf   :  { %4090 = vmatprep.subr.mxu0 %v7272_v29  ;;  %4080 = vmatpush3.msra.mxu1 %v5730_v17  ;;  %v7297_v29 = vand.u32 4294901760, %v5721_v51  ;;  %v7299_v51 = vand.u32 4294901760, %v5675_v16  ;;  %v112_v16 = vld [vmem:[%s6866_s1 + $0x2c8] sm:$0xff] }
  0xc0   :  { %4091 = vmatpush3.msra.mxu0 %v7273_v32  ;;  %4081 = vmatprep.subr.mxu1 %v5737_v1 }
  0xc1   :  { %4092 = vmatprep.subr.mxu0 %v7274_v45  ;;  %4082 = vmatpush3.msra.mxu1 %v5744_v15  ;;  %v97_v45 = vld [vmem:[%s6866_s1 + $0x250] sm:$0xff] }
  0xc2   :  { %1615 = vmatprep.mubr.f32.mxu1 %v7275_v41  ;;  %4093 = vmatpush3.msra.mxu0 %v7276_v14 }
  0xc3   :  { %1619 = vmatmul.mubr.f32.vlgmr.msra.gmra.mxu1 %v7277_v42  ;;  %4094 = vmatprep.subr.mxu0 %v7278_v10  ;;  %v7301_v42 = vand.u32 4294901760, %v5741_v24  ;;  %v6041_v10 = vand.u32 4294901760, %v114_v11 }
  0xc4   :  { %4121 = vmatprep.subr.mxu1 %v5256_v20  ;;  %4095 = vmatpush3.msra.mxu0 %v7279_v13  ;;  %v118_v20 = vld [vmem:[%s6866_s1 + $0x2f8] sm:$0xff] }
  0xc5   :  { %4122 = vmatpush3.msra.mxu1 %v5251_v19  ;;  %4096 = vmatprep.subr.mxu0 %v7280_v9  ;;  %v7283_v19 = vand.u32 4294901760, %v7246_v40  ;;  %v5938_v7 = vand.u32 4294901760, %v118_v20  ;;  %v100_v40 = vld [vmem:[%s6866_s1 + $0x268] sm:$0xff]  ;;  %7302 = vst [vmem:[#allocation27_spill] sm:$0xff] %v6041_v10 }
  0xc6   :  { %4123 = vmatprep.subr.mxu1 %v5264_v47  ;;  %4097 = vmatpush3.msra.mxu0 %v7281_v34  ;;  %v7284_v47 = vand.u32 4294901760, %v7248_v57  ;;  %v6058_v34 = vand.u32 4294901760, %v97_v45 }
  0xc7   :  { %4124 = vmatpush3.msra.mxu1 %v5266_v25  ;;  %4098 = vmatprep.subr.mxu0 %v7282_v5  ;;  %v7285_v25 = vand.u32 4294901760, %v7250_v0  ;;  %v5972_v57 = vsub.f32 %v118_v20, %v5938_v7  ;;  %v5979_v0 = vand.u32 4294901760, %v116_v44  ;;  %v96_v5 = vld [vmem:[%s6866_s1 + $0x248] sm:$0xff] }
  0xc8   :  { %4125 = vmatprep.subr.mxu1 %v7245_v63  ;;  %4099 = vmatpush3.msra.mxu0 %v7283_v19  ;;  %v5963_v63 = vand.u32 4294901760, %v117_v62  ;;  %7305 = vst [vmem:[#allocation8_spill] sm:$0xff] %v6058_v34 }
  0xc9   :  { %4126 = vmatpush3.msra.mxu1 %v7247_v3  ;;  %4100 = vmatprep.subr.mxu0 %v7284_v47  ;;  %v7289_v3 = vand.u32 4294901760, %v5595_v54  ;;  %7291 = vst [vmem:[#allocation16_spill] sm:$0xff] %v5979_v0  ;;  %v7292_v54 = vand.u32 4294901760, %v5622_v53  ;;  %v6028_v41 = vsub.f32 %v116_v44, %v5979_v0  ;;  %v7312_v44 = vld [vmem:[#allocation34_spill] sm:$0xff] }
  0xca   :  { %4127 = vmatprep.subr.mxu1 %v7249_v30  ;;  %4101 = vmatpush3.msra.mxu0 %v7285_v25  ;;  %v5977_v30 = vand.u32 4294901760, %v101_v22  ;;  %v6002_v53 = vsub.f32 %v117_v62, %v5963_v63  ;;  %v7307_v25 = vld [vmem:[#allocation31_spill] sm:$0xff] }
  0xcb   :  { %4128 = vmatpush3.msra.mxu1 %v7251_v33  ;;  %4102 = vmatprep.subr.mxu0 %v7286_v27  ;;  %v115_v33 = vld [vmem:[%s6866_s1 + $0x2e0] sm:$0xff]  ;;  %v7014_v47 = vand.u32 4294901760, %v6028_v41 }
  0xcc   :  { %4129 = vmatprep.subr.mxu1 %v7252_v37  ;;  %4103 = vmatpush3.msra.mxu0 %v7287_v23  ;;  %v5987_v37 = vand.u32 4294901760, %v100_v40  ;;  %v6017_v32 = vsub.f32 %v101_v22, %v5977_v30  ;;  %v7017_v9 = vand.u32 4294901760, %v6002_v53  ;;  %v6080_v23 = vand.u32 4294901760, %v112_v16  ;;  %v7311_v22 = vld [vmem:[#allocation18_spill] sm:$0xff] }
  0xcd   :  { %4130 = vmatpush3.msra.mxu1 %v7254_v43  ;;  %4104 = vmatprep.subr.mxu0 %v7288_v35  ;;  %v5996_v43 = vsub.f32 %v102_v12, %v5961_v28  ;;  %v7308_v12 = vld [vmem:[#allocation33_spill] sm:$0xff]  ;;  %v7313_v35 = vand.u32 4294901760, %v7312_v44 }
  0xce   :  { %4131 = vmatprep.subr.mxu1 %v7255_v21  ;;  %4105 = vmatpush3.msra.mxu0 %v7289_v3  ;;  %7293 = vst [vmem:[#allocation14_spill] sm:$0xff] %v5987_v37  ;;  %v98_v21 = vld [vmem:[%s6866_s1 + $0x258] sm:$0xff]  ;;  %v7016_v19 = vand.u32 4294901760, %v6017_v32  ;;  %v7309_v62 = vand.u32 4294901760, %v7308_v12  ;;  %7310 = vst [vmem:[#allocation15_spill] sm:$0xff] %v6080_v23  ;;  %v6097_v3 = vsub.f32 %v6002_v53, %v7017_v9 }
  0xcf   :  { %4132 = vmatpush3.msra.mxu1 %v7256_v55  ;;  %4106 = vmatprep.subr.mxu0 %v7290_v60  ;;  %v7295_v55 = vand.u32 4294901760, %v5630_v26  ;;  %v113_v26 = vld [vmem:[%s6866_s1 + $0x2d0] sm:$0xff]  ;;  %v6036_v14 = vand.u32 4294901760, %v98_v21  ;;  %v7018_v13 = vand.u32 4294901760, %v5996_v43  ;;  %v6099_v60 = vand.u32 4294901760, %v96_v5 }
  0xd0   :  { %4133 = vmatprep.subr.mxu1 %v7257_v50  ;;  %4107 = vmatpush3.msra.mxu0 %v7292_v54  ;;  %v6007_v50 = vand.u32 4294901760, %v115_v33  ;;  %v6105_v54 = vsub.f32 %v114_v11, %v6041_v10  ;;  %v6128_v11 = vsub.f32 %v6028_v41, %v7014_v47  ;;  %v6147_v44 = vsub.f32 %v112_v16, %v6080_v23  ;;  %v6174_v47 = vld [vmem:[%s6865_s0 + $0x8] sm:$0x3f] }
  0xd1   :  { %4134 = vmatpush3.msra.mxu1 %v7258_v46  ;;  %4108 = vmatprep.subr.mxu0 %v7294_v39  ;;  %v7020_v46 = vand.u32 4294901760, %v5972_v57  ;;  %7300 = vst [vmem:[#allocation7_spill] sm:$0xff] %v6036_v14  ;;  %v6078_v27 = vsub.f32 %v98_v21, %v6036_v14  ;;  %7314 = vst [vmem:[#allocation21_spill] sm:$0xff] %v6099_v60 }
  0xd2   :  { %4135 = vmatprep.subr.mxu1 %v7259_v4  ;;  %4109 = vmatpush3.msra.mxu0 %v7295_v55  ;;  %7296 = vst [vmem:[#allocation6_spill] sm:$0xff] %v6007_v50  ;;  %v6019_v4 = vand.u32 4294901760, %v99_v56  ;;  %v6064_v20 = vsub.f32 %v115_v33, %v6007_v50  ;;  %v111_v33 = vld [vmem:[%s6866_s1 + $0x2c0] sm:$0xff]  ;;  %v6112_v55 = vsub.f32 %v97_v45, %v6058_v34  ;;  %7324 = vst [vmem:[#allocation12_spill] sm:$0xff] %v6174_v47 }
  0xd3   :  { %4136 = vmatpush3.msra.mxu1 %v7260_v8  ;;  %4110 = vmatprep.subr.mxu0 %v7297_v29  ;;  %v6034_v8 = vsub.f32 %v100_v40, %v5987_v37  ;;  %v6054_v24 = vsub.f32 %v5972_v57, %v7020_v46  ;;  %v6092_v40 = vsub.f32 %v5996_v43, %v7018_v13  ;;  %v7026_v46 = vand.u32 4294901760, %v6147_v44  ;;  %v92_v13 = vld [vmem:[%s6866_s1 + $0x228] sm:$0xff] }
  0xd4   :  { %7298 = vst [vmem:[#allocation30_spill] sm:$0xff] %v6019_v4  ;;  %4137 = vmatprep.subr.mxu1 %v7261_v49  ;;  %4111 = vmatpush3.msra.mxu0 %v7299_v51  ;;  %v7303_v49 = vand.u32 4294901760, %v5728_v36  ;;  %v7306_v36 = vand.u32 4294901760, %v5755_v59  ;;  %v95_v59 = vld [vmem:[%s6866_s1 + $0x240] sm:$0xff]  ;;  %v7015_v29 = vand.u32 4294901760, %v6064_v20 }
  0xd5   :  { %4138 = vmatpush3.msra.mxu1 %v7262_v31  ;;  %4112 = vmatprep.subr.mxu0 %v7301_v42  ;;  %v6056_v31 = vand.u32 4294901760, %v113_v26  ;;  %v7317_v42 = vld [vmem:[#allocation22_spill] sm:$0xff]  ;;  %v6130_v45 = vand.u32 4294901760, %v95_v59 }
  0xd6   :  { %4139 = vmatprep.subr.mxu1 %v7263_v2  ;;  %4113 = vmatpush3.msra.mxu0 %v7303_v49  ;;  %v6070_v2 = vsub.f32 %v99_v56, %v6019_v4  ;;  %v7315_v56 = vld [vmem:[#allocation35_spill] sm:$0xff]  ;;  %v7318_v49 = vld [vmem:[#allocation29_spill] sm:$0xff]  ;;  %v6162_v16 = vsub.f32 %v6064_v20, %v7015_v29 }
  0xd7   :  { %7304 = vst [vmem:[#allocation19_spill] sm:$0xff] %v6056_v31  ;;  %4140 = vmatpush3.msra.mxu1 %v5544_v58  ;;  %4114 = vmatprep.subr.mxu0 %v7306_v36  ;;  %v7013_v58 = vand.u32 4294901760, %v6034_v8  ;;  %v7316_v39 = vand.u32 4294901760, %v7315_v56  ;;  %v6116_v51 = vsub.f32 %v113_v26, %v6056_v31  ;;  %7319 = vst [vmem:[#allocation10_spill] sm:$0xff] %v6130_v45  ;;  %v110_v26 = vld [vmem:[%s6866_s1 + $0x2b8] sm:$0xff] }
  0xd8   :  { %4141 = vmatprep.subr.mxu1 %v7307_v25  ;;  %4115 = vmatpush3.msra.mxu0 %v7309_v62  ;;  %v7019_v36 = vand.u32 4294901760, %v6070_v2  ;;  %v7320_v25 = vld [vmem:[#allocation25_spill] sm:$0xff]  ;;  %v6143_v62 = vand.u32 4294901760, %v111_v33  ;;  %v6154_v56 = vsub.f32 %v96_v5, %v6099_v60 }
  0xd9   :  { %4142 = vmatpush3.msra.mxu1 %v7311_v22  ;;  %4116 = vmatprep.subr.mxu0 %v7313_v35  ;;  %v6141_v12 = vsub.f32 %v6034_v8, %v7013_v58  ;;  %v7021_v22 = vand.u32 4294901760, %v6078_v27  ;;  %v7023_v5 = vand.u32 4294901760, %v6116_v51  ;;  %v7024_v58 = vand.u32 4294901760, %v6112_v55 }
  0xda   :  { %4143 = vmatprep.subr.mxu1 %v5597_v48  ;;  %4117 = vmatpush3.msra.mxu0 %v7316_v39  ;;  %v6123_v48 = vsub.f32 %v6017_v32, %v7016_v19  ;;  %7321 = vst [vmem:[#allocation9_spill] sm:$0xff] %v6143_v62  ;;  %7322 = vst [vmem:[#allocation11_spill] sm:$0xff] %v6154_v56  ;;  %v7022_v39 = vand.u32 4294901760, %v6105_v54  ;;  %v6181_v19 = vsub.f32 %v95_v59, %v6130_v45  ;;  %v109_v59 = vld [vmem:[%s6866_s1 + $0x2b0] sm:$0xff] }
  0xdb   :  { %1785 = vmatprep.mubr.f32.mxu0 %v7317_v42  ;;  %4144 = vmatpush3.msra.mxu1 %v7318_v49  ;;  %v6164_v49 = vand.u32 4294901760, %v110_v26  ;;  %v6186_v9 = vsub.f32 %v6070_v2, %v7019_v36  ;;  %v93_v36 = vld [vmem:[%s6866_s1 + $0x230] sm:$0xff]  ;;  %v6204_v29 = vsub.f32 %v111_v33, %v6143_v62  ;;  %v6234_v35 = vsub.f32 %v6112_v55, %v7024_v58 }
  0xdc   :  { %1787 = vmatmul.mubr.f32.vlgmr.msra.gmra.mxu0 %v7320_v25  ;;  %4145 = vmatprep.subr.mxu1 %v7265_v38  ;;  %7325 = vst [vmem:[#allocation13_spill] sm:$0xff] %v6181_v19  ;;  %v7328_v38 = vld [vmem:[#allocation28_spill] sm:$0xff] }
  0xdd   :  { %4156 = vmatprep.subr.mxu0 %v5938_v7  ;;  %4146 = vmatpush3.msra.mxu1 %v7267_v6  ;;  %7323 = vst [vmem:[#allocation24_spill] sm:$0xff] %v6164_v49  ;;  %v94_v6 = vld [vmem:[%s6866_s1 + $0x238] sm:$0xff]  ;;  %7326 = vst [vmem:[#allocation26_spill] sm:$0xff] %v6204_v29  ;;  %v6221_v33 = vrot.slane %v6174_v47, %v7328_v38  ;;  %v6237_v21 = vsub.f32 %v110_v26, %v6164_v49  ;;  %v91_v47 = vld [vmem:[%s6866_s1 + $0x220] sm:$0xff] }
  0xde   :  { %4157 = vmatpush3.msra.mxu0 %v5961_v28  ;;  %4147 = vmatprep.subr.mxu1 %v7269_v52  ;;  %v6244_v52 = vand.u32 4294901760, %v93_v36  ;;  %v107_v38 = vld [vmem:[%s6866_s1 + $0x2a0] sm:$0xff] }
  0xdf   :  { %4158 = vmatprep.subr.mxu0 %v5963_v63  ;;  %4148 = vmatpush3.msra.mxu1 %v5678_v61  ;;  %v6194_v61 = vsub.f32 %v6078_v27, %v7021_v22  ;;  %v6213_v22 = vand.u32 4294901760, %v94_v6  ;;  %7329 = vst [vmem:[#allocation17_spill] sm:$0xff] %v6237_v21 }
  0xe0   :  { %4159 = vmatpush3.msra.mxu0 %v5977_v30  ;;  %4149 = vmatprep.subr.mxu1 %v5700_v18  ;;  %v6211_v18 = vsub.f32 %v6105_v54, %v7022_v39  ;;  %v6229_v39 = vsub.f32 %v6116_v51, %v7023_v5  ;;  %7331 = vst [vmem:[#allocation20_spill] sm:$0xff] %v6244_v52  ;;  %v108_v5 = vld [vmem:[%s6866_s1 + $0x2a8] sm:$0xff] }
  0xe1   :  { %4160 = vmatprep.subr.mxu0 %v5979_v0  ;;  %4150 = vmatpush3.msra.mxu1 %v5730_v17  ;;  %7327 = vst [vmem:[#allocation5_spill] sm:$0xff] %v6213_v22  ;;  %v6242_v17 = vand.u32 4294901760, %v109_v59  ;;  %v6268_v26 = vsub.f32 %v94_v6, %v6213_v22 }
  0xe2   :  { %4161 = vmatpush3.msra.mxu0 %v5987_v37  ;;  %4151 = vmatprep.subr.mxu1 %v5737_v1  ;;  %v6258_v1 = vand.u32 4294901760, %v92_v13  ;;  %v7336_v37 = vand.u32 4294901760, %v6092_v40  ;;  %v104_v40 = vld [vmem:[%s6866_s1 + $0x288] sm:$0xff] }
  0xe3   :  { %4162 = vmatprep.subr.mxu0 %v6007_v50  ;;  %4152 = vmatpush3.msra.mxu1 %v5744_v15  ;;  %7330 = vst [vmem:[#allocation23_spill] sm:$0xff] %v6242_v17  ;;  %v6256_v15 = vsub.f32 %v6147_v44, %v7026_v46  ;;  %v7333_v46 = vand.u32 4294901760, %v6154_v56  ;;  %v90_v50 = vld [vmem:[%s6866_s1 + $0x218] sm:$0xff] }
  0xe4   :  { %1889 = vmatprep.mubr.f32.mxu1 %v7317_v42  ;;  %4163 = vmatpush3.msra.mxu0 %v6019_v4  ;;  %7332 = vst [vmem:[#allocation32_spill] sm:$0xff] %v6258_v1  ;;  %v2153_v42 = vand.u32 4294901760, %v6211_v18  ;;  %v162_v4 = vcombine.high %v6221_v33, %v6221_v33  ;;  %v7338_v18 = vand.u32 4294901760, %v6181_v19 }
  0xe5   :  { %1891 = vmatmul.mubr.f32.vlgmr.msra.gmra.mxu1 %v7320_v25  ;;  %4164 = vmatprep.subr.mxu0 %v6041_v10  ;;  %v6273_v58 = vsub.f32 %v6154_v56, %v7333_v46  ;;  %v7334_v25 = vand.u32 4294901760, %v6054_v24  ;;  %v6285_v10 = vand.u32 4294901760, %v108_v5  ;;  %v6295_v24 = vsub.f32 %v93_v36, %v6244_v52  ;;  %v106_v46 = vld [vmem:[%s6866_s1 + $0x298] sm:$0xff] }
  0xe6   :  { %4165 = vmatpush3.msra.mxu0 %v6036_v14  ;;  %v6302_v6 = vsub.f32 %v6181_v19, %v7338_v18  ;;  %v6308_v14 = vsub.f32 %v109_v59, %v6242_v17  ;;  %v6315_v36 = vsub.f32 %v92_v13, %v6258_v1  ;;  %v7340_v18 = vand.u32 4294901760, %v6204_v29  ;;  %v89_v59 = vld [vmem:[%s6866_s1 + $0x210] sm:$0xff] }
  0xe7   :  { %4191 = vmatprep.subr.mxu1 %v7334_v25  ;;  %7335 = vst [vmem:[#allocation31_spill] sm:$0xff] %v6285_v10  ;;  %4166 = vmatprep.subr.mxu0 %v6056_v31  ;;  %v6297_v25 = vand.u32 4294901760, %v91_v47  ;;  %v6317_v31 = vand.u32 4294901760, %v107_v38  ;;  %v6331_v13 = vand.u32 4294901760, %v90_v50  ;;  %v6356_v56 = vand.u32 4294901760, %v6221_v33 }
  0xe8   :  { %4192 = vmatpush3.msra.mxu1 %v7336_v37  ;;  %v7339_v37 = vand.u32 4294901760, %v6097_v3  ;;  %4167 = vmatpush3.msra.mxu0 %v6058_v34  ;;  %v6322_v19 = vsub.f32 %v6204_v29, %v7340_v18  ;;  %v7341_v3 = vand.u32 4294901760, %v6123_v48  ;;  %v105_v18 = vld [vmem:[%s6866_s1 + $0x290] sm:$0xff]  ;;  %v6337_v34 = vand.u32 4294901760, %v162_v4 }
  0xe9   :  { %7337 = vst [vmem:[#allocation33_spill] sm:$0xff] %v6297_v25  ;;  %4168 = vmatprep.subr.mxu0 %v6080_v23  ;;  %7342 = vst [vmem:[#allocation18_spill] sm:$0xff] %v6331_v13  ;;  %v7344_v29 = vand.u32 4294901760, %v6128_v11  ;;  %v6342_v48 = vand.u32 4294901760, %v106_v46  ;;  %v6353_v23 = vsub.f32 %v108_v5, %v6285_v10  ;;  %v6362_v11 = vsub.f32 %v91_v47, %v6297_v25  ;;  %v88_v47 = vld [vmem:[%s6866_s1 + $0x208] sm:$0xff] }
  0xea   :  { %4193 = vmatprep.subr.mxu1 %v7339_v37  ;;  %7343 = vst [vmem:[#allocation34_spill] sm:$0xff] %v6337_v34  ;;  %4169 = vmatpush3.msra.mxu0 %v6099_v60  ;;  %7347 = vst [vmem:[#allocation22_spill] sm:$0xff] %v6356_v56  ;;  %v7349_v5 = vand.u32 4294901760, %v6162_v16  ;;  %v2174_v0 = vand.u32 4294901760, %v6322_v19  ;;  %v7351_v60 = vand.u32 4294901760, %v6186_v9  ;;  %v6385_v16 = vsub.f32 %v90_v50, %v6331_v13 }
  0xeb   :  { %4194 = vmatpush3.msra.mxu1 %v7341_v3  ;;  %7345 = vst [vmem:[#allocation35_spill] sm:$0xff] %v6342_v48  ;;  %v7346_v3 = vand.u32 4294901760, %v6237_v21  ;;  %4170 = vmatprep.subr.mxu0 %v6143_v62  ;;  %v7352_v19 = vand.u32 4294901760, %v6268_v26  ;;  %v7355_v62 = vand.u32 4294901760, %v6229_v39 }
  0xec   :  { %4195 = vmatprep.subr.mxu1 %v7344_v29  ;;  %v7348_v29 = vand.u32 4294901760, %v6141_v12  ;;  %4171 = vmatpush3.msra.mxu0 %v6130_v45  ;;  %v6372_v12 = vand.u32 4294901760, %v105_v18  ;;  %v103_v45 = vld [vmem:[%s6866_s1 + $0x280] sm:$0xff] }
  0xed   :  { %v6347_v37 = vsub.f32 %v6237_v21, %v7346_v3  ;;  %v2062_v3 = vand.u32 4294901760, %v6302_v6  ;;  %v6366_v21 = vand.u32 4294901760, %v89_v59  ;;  %v6379_v6 = vsub.f32 %v107_v38, %v6317_v31  ;;  %4172 = vmatprep.subr.mxu0 %v6164_v49  ;;  %2233 = vmatprep.mubr.f32.mxu1 %v6337_v34 }
  0xee   :  { %4196 = vmatpush3.msra.mxu1 %v7348_v29  ;;  %7350 = vst [vmem:[#allocation29_spill] sm:$0xff] %v6372_v12  ;;  %v6390_v29 = vand.u32 4294901760, %v104_v40  ;;  %v6396_v38 = vsub.f32 %v162_v4, %v6337_v34  ;;  %4173 = vmatpush3.msra.mxu0 %v6213_v22  ;;  %v6409_v49 = vsub.f32 %v106_v46, %v6342_v48  ;;  %v7353_v4 = vand.u32 4294901760, %v6194_v61 }
  0xef   :  { %4197 = vmatprep.subr.mxu1 %v7349_v5  ;;  %v2068_v5 = vsub.f32 %v6268_v26, %v7352_v19  ;;  %v2181_v9 = vand.u32 4294901760, %v6347_v37  ;;  %v6406_v19 = vsub.f32 %v6221_v33, %v6356_v56  ;;  %4174 = vmatprep.subr.mxu0 %v6242_v17  ;;  %v6418_v50 = vsub.f32 %v89_v59, %v6366_v21 }
  0xf0   :  { %4198 = vmatpush3.msra.mxu1 %v7351_v60  ;;  %v87_v60 = vld [vmem:[%s6866_s1 + $0x200] sm:$0xff]  ;;  %v6420_v22 = vand.u32 4294901760, %v88_v47  ;;  %4175 = vmatpush3.msra.mxu0 %v6244_v52  ;;  %v7356_v61 = vand.u32 4294901760, %v6295_v24  ;;  %v6433_v59 = vsub.f32 %v105_v18, %v6372_v12  ;;  %v7357_v17 = vand.u32 4294901760, %v6234_v35 }
  0xf1   :  { %4199 = vmatprep.subr.mxu1 %v2153_v42  ;;  %v7354_v42 = vand.u32 4294901760, %v6308_v14  ;;  %4176 = vmatprep.subr.mxu0 %v6285_v10  ;;  %v2069_v39 = vand.u32 4294901760, %v2068_v5  ;;  %v7359_v18 = vand.u32 4294901760, %v6353_v23  ;;  %v6451_v5 = vsub.f32 %v104_v40, %v6390_v29 }
  0xf2   :  { %4200 = vmatpush3.msra.mxu1 %v7353_v4  ;;  %v2075_v46 = vsub.f32 %v6295_v24, %v7356_v61  ;;  %v6429_v4 = vand.u32 4294901760, %v103_v45  ;;  %v7358_v61 = vand.u32 4294901760, %v6256_v15  ;;  %4177 = vmatpush3.msra.mxu0 %v6258_v1  ;;  %v7360_v33 = vand.u32 4294901760, %v6273_v58  ;;  %v7396_v34 = vld [vmem:[#allocation35_spill] sm:$0xff] }
  0xf3   :  { %v2187_v37 = vsub.f32 %v6308_v14, %v7354_v42  ;;  %4201 = vmatprep.subr.mxu1 %v7355_v62  ;;  %v6438_v62 = vand.u32 4294901760, %v87_v60  ;;  %v2194_v42 = vsub.f32 %v6353_v23, %v7359_v18  ;;  %4178 = vmatprep.subr.mxu0 %v6317_v31  ;;  %v7362_v52 = vand.u32 4294901760, %v6315_v36 }
  0xf4   :  { %4202 = vmatpush3.msra.mxu1 %v7357_v17  ;;  %4179 = vmatpush3.msra.mxu0 %v6297_v25  ;;  %v2076_v40 = vand.u32 4294901760, %v2075_v46  ;;  %v7363_v17 = vand.u32 4294901760, %v6379_v6  ;;  %v7367_v46 = vand.u32 4294901760, %v6362_v11 }
  0xf5   :  { %4203 = vmatprep.subr.mxu1 %v7358_v61  ;;  %v2188_v15 = vand.u32 4294901760, %v2187_v37  ;;  %v6457_v61 = vsub.f32 %v88_v47, %v6420_v22  ;;  %v2082_v18 = vsub.f32 %v6315_v36, %v7362_v52  ;;  %v6469_v37 = vsub.f32 %v103_v45, %v6429_v4  ;;  %4180 = vmatprep.subr.mxu0 %v6342_v48 }
  0xf6   :  { %4204 = vmatpush3.msra.mxu1 %v7360_v33  ;;  %v2201_v58 = vsub.f32 %v6379_v6, %v7363_v17  ;;  %v6473_v52 = vsub.f32 %v87_v60, %v6438_v62  ;;  %v2089_v35 = vsub.f32 %v6362_v11, %v7367_v46  ;;  %4181 = vmatpush3.msra.mxu0 %v6331_v13  ;;  %v2195_v45 = vand.u32 4294901760, %v2194_v42 }
  0xf7   :  { %7361 = vst [vmem:[#allocation25_spill] sm:$0xff] %v6457_v61  ;;  %4205 = vmatprep.subr.mxu1 %v2174_v0  ;;  %7364 = vst [vmem:[#allocation36_spill] sm:$0xff] %v6469_v37  ;;  %v7366_v0 = vand.u32 4294901760, %v6396_v38  ;;  %v7369_v60 = vand.u32 4294901760, %v6409_v49  ;;  %4182 = vmatprep.subr.mxu0 %v6372_v12  ;;  %v2083_v46 = vand.u32 4294901760, %v2082_v18  ;;  %v7370_v17 = vand.u32 4294901760, %v6385_v16 }
  0xf8   :  { %4206 = vmatpush3.msra.mxu1 %v2062_v3  ;;  %7365 = vst [vmem:[#allocation37_spill] sm:$0xff] %v6473_v52  ;;  %v7368_v3 = vand.u32 4294901760, %v6406_v19  ;;  %4183 = vmatpush3.msra.mxu0 %v6366_v21  ;;  %v7371_v13 = vand.u32 4294901760, %v6433_v59  ;;  %v2090_v18 = vand.u32 4294901760, %v2089_v35  ;;  %v7372_v12 = vand.u32 4294901760, %v6418_v50 }
  0xf9   :  { %v1995_v47 = vsub.f32 %v6396_v38, %v7366_v0  ;;  %4207 = vmatprep.subr.mxu1 %v2181_v9  ;;  %v2208_v48 = vsub.f32 %v6409_v49, %v7369_v60  ;;  %v2096_v9 = vsub.f32 %v6385_v16, %v7370_v17  ;;  %4184 = vmatprep.subr.mxu0 %v6390_v29  ;;  %v7374_v35 = vand.u32 4294901760, %v6457_v61 }
  0xfa   :  { %v2001_v33 = vsub.f32 %v6406_v19, %v7368_v3  ;;  %4208 = vmatpush3.msra.mxu1 %v2069_v39  ;;  %v2202_v3 = vand.u32 4294901760, %v2201_v58  ;;  %v2215_v60 = vsub.f32 %v6433_v59, %v7371_v13  ;;  %v2103_v17 = vsub.f32 %v6418_v50, %v7372_v12  ;;  %4185 = vmatpush3.msra.mxu0 %v6420_v22 }
  0xfb   :  { %4209 = vmatprep.subr.mxu1 %v2188_v15  ;;  %v1996_v39 = vand.u32 4294901760, %v1995_v47  ;;  %v7073_v15 = vand.u32 4294901760, %v6473_v52  ;;  %v2209_v42 = vand.u32 4294901760, %v2208_v48  ;;  %v7373_v13 = vand.u32 4294901760, %v6451_v5  ;;  %4186 = vmatprep.subr.mxu0 %v6429_v4 }
  0xfc   :  { %4210 = vmatpush3.msra.mxu1 %v2076_v40  ;;  %v2002_v58 = vand.u32 4294901760, %v2001_v33  ;;  %v2097_v40 = vand.u32 4294901760, %v2096_v9  ;;  %v2110_v47 = vsub.f32 %v6457_v61, %v7374_v35  ;;  %4187 = vmatpush3.msra.mxu0 %v6438_v62  ;;  %v2216_v12 = vand.u32 4294901760, %v2215_v60  ;;  %v7383_v35 = vld [vmem:[#allocation17_spill] sm:$0xff] }
  0xfd   :  { %4211 = vmatprep.subr.mxu1 %v2195_v45  ;;  %v2222_v0 = vsub.f32 %v6451_v5, %v7373_v13  ;;  %v7375_v45 = vand.u32 4294901760, %v6469_v37  ;;  %1997 = vmatprep.mubr.f32.mxu0 %v1996_v39  ;;  %v2104_v33 = vand.u32 4294901760, %v2103_v17  ;;  %v7379_v17 = vld [vmem:[#allocation26_spill] sm:$0xff]  ;;  %v7381_v13 = vld [vmem:[#allocation13_spill] sm:$0xff] }
  0xfe   :  { %4212 = vmatpush3.msra.mxu1 %v2083_v46  ;;  %v2117_v46 = vsub.f32 %v6473_v52, %v7073_v15  ;;  %2003 = vmatmul.mubr.f32.vlgmr.msra.gmra.mxu0 %v2002_v58  ;;  %v7380_v58 = vld [vmem:[#allocation6_spill] sm:$0xff]  ;;  %v7394_v15 = vld [vmem:[#allocation23_spill] sm:$0xff] }
  0xff   :  { %4213 = vmatprep.subr.mxu1 %v2202_v3  ;;  %v2229_v48 = vsub.f32 %v6469_v37, %v7375_v45  ;;  %v2223_v9 = vand.u32 4294901760, %v2222_v0  ;;  %4226 = vmatprep.subr.mxu0 %v5972_v57  ;;  %v2111_v3 = vand.u32 4294901760, %v2110_v47  ;;  %v7376_v0 = vld [vmem:[#allocation16_spill] sm:$0xff]  ;;  %v7384_v47 = vld [vmem:[#allocation27_spill] sm:$0xff] }
 0x100   :  { %4214 = vmatpush3.msra.mxu1 %v2090_v18  ;;  %4227 = vmatpush3.msra.mxu0 %v5996_v43  ;;  %v2118_v39 = vand.u32 4294901760, %v2117_v46  ;;  %v7378_v18 = vld [vmem:[#allocation14_spill] sm:$0xff]  ;;  %v7386_v45 = vld [vmem:[#allocation19_spill] sm:$0xff]  ;;  %v7389_v46 = vld [vmem:[#allocation21_spill] sm:$0xff] }
 0x101   :  { %4215 = vmatprep.subr.mxu1 %v2209_v42  ;;  %v2230_v60 = vand.u32 4294901760, %v2229_v48  ;;  %4228 = vmatprep.subr.mxu0 %v6002_v53  ;;  %v7377_v42 = vld [vmem:[#allocation11_spill] sm:$0xff]  ;;  %v7387_v48 = vld [vmem:[#allocation8_spill] sm:$0xff] }
 0x102   :  { %4216 = vmatpush3.msra.mxu1 %v2097_v40  ;;  %4229 = vmatpush3.msra.mxu0 %v6017_v32  ;;  %v7382_v40 = vld [vmem:[#allocation30_spill] sm:$0xff] }
 0x103   :  { %4217 = vmatprep.subr.mxu1 %v2216_v12  ;;  %4230 = vmatprep.subr.mxu0 %v6028_v41  ;;  %v7385_v12 = vld [vmem:[#allocation7_spill] sm:$0xff] }
 0x104   :  { %4218 = vmatpush3.msra.mxu1 %v2104_v33  ;;  %4231 = vmatpush3.msra.mxu0 %v6034_v8  ;;  %v7388_v33 = vld [vmem:[#allocation15_spill] sm:$0xff] }
 0x105   :  { %4219 = vmatprep.subr.mxu1 %v2223_v9  ;;  %4232 = vmatprep.subr.mxu0 %v6064_v20  ;;  %v7390_v9 = vld [vmem:[#allocation9_spill] sm:$0xff] }
 0x106   :  { %4220 = vmatpush3.msra.mxu1 %v2111_v3  ;;  %4233 = vmatpush3.msra.mxu0 %v6070_v2  ;;  %v7391_v3 = vld [vmem:[#allocation10_spill] sm:$0xff] }
 0x107   :  { %4221 = vmatprep.subr.mxu1 %v2230_v60  ;;  %4234 = vmatprep.subr.mxu0 %v6105_v54  ;;  %v7392_v60 = vld [vmem:[#allocation24_spill] sm:$0xff] }
 0x108   :  { %4222 = vmatpush3.msra.mxu1 %v2118_v39  ;;  %4235 = vmatpush3.msra.mxu0 %v6078_v27  ;;  %v7393_v39 = vld [vmem:[#allocation5_spill] sm:$0xff] }
 0x109   :  { %2235 = vmatmul.mubr.f32.vlgmr.msra.gmra.mxu1 %v6356_v56  ;;  %4261 = vmatprep.subr.mxu1 %v5938_v7  ;;  %v7395_v56 = vld [vmem:[#allocation20_spill] sm:$0xff] }
 0x10a   :  { %4262 = vmatpush3.msra.mxu1 %v5961_v28  ;;  %4236 = vmatprep.subr.mxu0 %v6116_v51 }
 0x10b   :  { %4263 = vmatprep.subr.mxu1 %v5963_v63  ;;  %4237 = vmatpush3.msra.mxu0 %v6112_v55 }
 0x10c   :  { %4264 = vmatpush3.msra.mxu1 %v5977_v30  ;;  %4238 = vmatprep.subr.mxu0 %v6147_v44 }
 0x10d   :  { %4265 = vmatprep.subr.mxu1 %v7376_v0  ;;  %4239 = vmatpush3.msra.mxu0 %v7377_v42 }
 0x10e   :  { %4266 = vmatpush3.msra.mxu1 %v7378_v18  ;;  %4240 = vmatprep.subr.mxu0 %v7379_v17 }
 0x10f   :  { %4267 = vmatprep.subr.mxu1 %v7380_v58  ;;  %4241 = vmatpush3.msra.mxu0 %v7381_v13 }
 0x110   :  { %4268 = vmatpush3.msra.mxu1 %v7382_v40  ;;  %4242 = vmatprep.subr.mxu0 %v7383_v35 }
 0x111   :  { %4269 = vmatprep.subr.mxu1 %v7384_v47  ;;  %4243 = vmatpush3.msra.mxu0 %v6268_v26 }
 0x112   :  { %4270 = vmatpush3.msra.mxu1 %v7385_v12  ;;  %4244 = vmatprep.subr.mxu0 %v6308_v14 }
 0x113   :  { %4271 = vmatprep.subr.mxu1 %v7386_v45  ;;  %4245 = vmatpush3.msra.mxu0 %v6295_v24 }
 0x114   :  { %4272 = vmatpush3.msra.mxu1 %v7387_v48  ;;  %4246 = vmatprep.subr.mxu0 %v6353_v23 }
 0x115   :  { %4273 = vmatprep.subr.mxu1 %v7388_v33  ;;  %4247 = vmatpush3.msra.mxu0 %v6315_v36 }
 0x116   :  { %4274 = vmatpush3.msra.mxu1 %v7389_v46  ;;  %4248 = vmatprep.subr.mxu0 %v6379_v6 }
 0x117   :  { %4275 = vmatprep.subr.mxu1 %v7390_v9  ;;  %4249 = vmatpush3.msra.mxu0 %v6362_v11 }
 0x118   :  { %4276 = vmatpush3.msra.mxu1 %v7391_v3  ;;  %4250 = vmatprep.subr.mxu0 %v6409_v49 }
 0x119   :  { %4277 = vmatprep.subr.mxu1 %v7392_v60  ;;  %4251 = vmatpush3.msra.mxu0 %v6385_v16 }
 0x11a   :  { %4278 = vmatpush3.msra.mxu1 %v7393_v39  ;;  %4252 = vmatprep.subr.mxu0 %v6433_v59 }
 0x11b   :  { %4279 = vmatprep.subr.mxu1 %v7394_v15  ;;  %4253 = vmatpush3.msra.mxu0 %v6418_v50 }
 0x11c   :  { %4280 = vmatpush3.msra.mxu1 %v7395_v56  ;;  %4254 = vmatprep.subr.mxu0 %v6451_v5 }
 0x11d   :  { %4281 = vmatprep.subr.mxu1 %v6285_v10  ;;  %4255 = vmatpush3.msra.mxu0 %v6457_v61  ;;  %v7397_v10 = vand.u32 4294901760, %v5972_v57  ;;  %v7398_v61 = vld [vmem:[#allocation18_spill] sm:$0xff]  ;;  %v7403_v57 = vand.u32 4294901760, %v6028_v41  ;;  %v7408_v41 = vand.u32 4294901760, %v6406_v19 }
 0x11e   :  { %4282 = vmatpush3.msra.mxu1 %v6258_v1  ;;  %4256 = vmatprep.subr.mxu0 %v6469_v37  ;;  %v7399_v1 = vand.u32 4294901760, %v5996_v43  ;;  %v7400_v37 = vld [vmem:[#allocation29_spill] sm:$0xff]  ;;  %v7404_v43 = vand.u32 4294901760, %v6034_v8  ;;  %v7410_v8 = vand.u32 4294901760, %v6078_v27  ;;  %v7415_v27 = vand.u32 4294901760, %v7377_v42 }
 0x11f   :  { %4283 = vmatprep.subr.mxu1 %v6317_v31  ;;  %4257 = vmatpush3.msra.mxu0 %v6473_v52  ;;  %v7401_v52 = vand.u32 4294901760, %v6002_v53  ;;  %v7405_v53 = vand.u32 4294901760, %v6064_v20  ;;  %v7411_v20 = vld [vmem:[#allocation12_spill] sm:$0xff] }
 0x120   :  { %2370 = vmatprep.mubr.f32.mxu0 %v6396_v38  ;;  %4284 = vmatpush3.msra.mxu1 %v6297_v25  ;;  %v7402_v25 = vand.u32 4294901760, %v6017_v32  ;;  %v7406_v32 = vand.u32 4294901760, %v6396_v38  ;;  %v7412_v38 = vand.u32 4294901760, %v6116_v51  ;;  %v7417_v51 = vand.u32 4294901760, %v7379_v17 }
 0x121   :  { %2373 = vmatmul.mubr.f32.vlgmr.msra.gmra.mxu0 %v6406_v19  ;;  %4285 = vmatprep.subr.mxu1 %v7396_v34  ;;  %v7421_v19 = vand.u32 4294901760, %v6308_v14  ;;  %v7424_v14 = vand.u32 4294901760, %v6315_v36  ;;  %v7427_v36 = vand.u32 4294901760, %v6409_v49  ;;  %v7430_v49 = vand.u32 4294901760, %v6418_v50 }
 0x122   :  { %4296 = vmatprep.subr.mxu0 %v7397_v10  ;;  %4286 = vmatpush3.msra.mxu1 %v7398_v61  ;;  %v7407_v10 = vand.u32 4294901760, %v6070_v2  ;;  %v7413_v2 = vand.u32 4294901760, %v6112_v55  ;;  %v7420_v55 = vand.u32 4294901760, %v6268_v26  ;;  %v7423_v26 = vand.u32 4294901760, %v6353_v23 }
 0x123   :  { %4297 = vmatpush3.msra.mxu0 %v7399_v1  ;;  %4287 = vmatprep.subr.mxu1 %v7400_v37  ;;  %v7409_v1 = vand.u32 4294901760, %v6105_v54  ;;  %v7416_v54 = vld [vmem:[#allocation28_spill] sm:$0xff]  ;;  %v7426_v23 = vand.u32 4294901760, %v6362_v11  ;;  %v7429_v11 = vand.u32 4294901760, %v6433_v59  ;;  %v7433_v59 = vld [vmem:[#allocation25_spill] sm:$0xff] }
 0x124   :  { %4298 = vmatprep.subr.mxu0 %v7401_v52  ;;  %4288 = vmatpush3.msra.mxu1 %v6366_v21  ;;  %v7422_v52 = vand.u32 4294901760, %v6295_v24  ;;  %v119_v24 = vld [vmem:[%s6866_s1 + $0x300] sm:$0xff] }
 0x125   :  { %4299 = vmatpush3.msra.mxu0 %v7402_v25  ;;  %4289 = vmatprep.subr.mxu1 %v6390_v29  ;;  %v147_v25 = vcombine.high %v7411_v20, %v7411_v20 }
 0x126   :  { %4300 = vmatprep.subr.mxu0 %v7403_v57  ;;  %4290 = vmatpush3.msra.mxu1 %v6420_v22 }
 0x127   :  { %4301 = vmatpush3.msra.mxu0 %v7404_v43  ;;  %4291 = vmatprep.subr.mxu1 %v6429_v4 }
 0x128   :  { %4302 = vmatprep.subr.mxu0 %v7405_v53  ;;  %4292 = vmatpush3.msra.mxu1 %v6438_v62 }
 0x129   :  { %2477 = vmatprep.mubr.f32.mxu1 %v7406_v32  ;;  %4303 = vmatpush3.msra.mxu0 %v7407_v10 }
 0x12a   :  { %2481 = vmatmul.mubr.f32.vlgmr.msra.gmra.mxu1 %v7408_v41  ;;  %4304 = vmatprep.subr.mxu0 %v7409_v1  ;;  %v3218_v1 = vld [vmem:[%s6868_s3] sm:$0xff] }
 0x12b   :  { %4331 = vmatprep.subr.mxu1 %v5938_v7  ;;  %4305 = vmatpush3.msra.mxu0 %v7410_v8  ;;  %v7414_v7 = vand.u32 4294901760, %v6147_v44 }
 0x12c   :  { %4332 = vmatpush3.msra.mxu1 %v5961_v28  ;;  %4306 = vmatprep.subr.mxu0 %v7412_v38  ;;  %v161_v28 = vrot.slane %v147_v25, %v7416_v54  ;;  %v6790_v38 = vand.u32 4294901760, %v3218_v1 }
 0x12d   :  { %4333 = vmatprep.subr.mxu1 %v5963_v63  ;;  %4307 = vmatpush3.msra.mxu0 %v7413_v2  ;;  %v7418_v63 = vand.u32 4294901760, %v7381_v13 }
 0x12e   :  { %4334 = vmatpush3.msra.mxu1 %v5977_v30  ;;  %4308 = vmatprep.subr.mxu0 %v7414_v7  ;;  %v7419_v30 = vand.u32 4294901760, %v7383_v35  ;;  %v170_v44 = vsel %vm169_vm0, %v161_v28, 0  ;;  %v7431_v35 = vand.u32 4294901760, %v6451_v5  ;;  %v6799_v54 = vsub.f32 %v3218_v1, %v6790_v38 }
 0x12f   :  { %4335 = vmatprep.subr.mxu1 %v7376_v0  ;;  %4309 = vmatpush3.msra.mxu0 %v7415_v27  ;;  %v120_v0 = vld [vmem:[%s6866_s1 + $0x308] sm:$0xff]  ;;  %v6652_v42 = vand.u32 4294901760, %v170_v44 }
 0x130   :  { %4336 = vmatpush3.msra.mxu1 %v7378_v18  ;;  %4310 = vmatprep.subr.mxu0 %v7417_v51  ;;  %v7425_v18 = vand.u32 4294901760, %v6379_v6  ;;  %v6663_v17 = vand.u32 4294901760, %v120_v0  ;;  %v7428_v6 = vand.u32 4294901760, %v6385_v16 }
 0x131   :  { %4337 = vmatprep.subr.mxu1 %v7380_v58  ;;  %4311 = vmatpush3.msra.mxu0 %v7418_v63  ;;  %v6671_v58 = vand.u32 4294901760, %v119_v24  ;;  %v6674_v13 = vsub.f32 %v170_v44, %v6652_v42  ;;  %v3360_v63 = vand.u32 4294901760, %v6799_v54 }
 0x132   :  { %4338 = vmatpush3.msra.mxu1 %v7382_v40  ;;  %4312 = vmatprep.subr.mxu0 %v7419_v30  ;;  %v2865_v40 = vsub.f32 %v120_v0, %v6663_v17  ;;  %v3803_v0 = vpop.f32.mrf.mxu1 }
 0x133   :  { %4339 = vmatprep.subr.mxu1 %v7384_v47  ;;  %4313 = vmatpush3.msra.mxu0 %v7420_v55  ;;  %v2872_v16 = vsub.f32 %v119_v24, %v6671_v58  ;;  %v2827_v47 = vand.u32 4294901760, %v6674_v13  ;;  %v3361_v55 = vsub.f32 %v6799_v54, %v3360_v63 }
 0x134   :  { %4340 = vmatpush3.msra.mxu1 %v7385_v12  ;;  %4314 = vmatprep.subr.mxu0 %v7421_v19  ;;  %v7432_v12 = vld [vmem:[#allocation31_spill] sm:$0xff]  ;;  %v2866_v50 = vand.u32 4294901760, %v2865_v40  ;;  %v3768_v19 = vpop.f32.mrf.mxu0 }
 0x135   :  { %4341 = vmatprep.subr.mxu1 %v7386_v45  ;;  %4315 = vmatpush3.msra.mxu0 %v7422_v52  ;;  %v7434_v45 = vand.u32 4294901760, %v7433_v59  ;;  %v3362_v44 = vand.u32 4294901760, %v3361_v55 }
 0x136   :  { %4342 = vmatpush3.msra.mxu1 %v7387_v48  ;;  %4316 = vmatprep.subr.mxu0 %v7423_v26  ;;  %v7435_v48 = vld [vmem:[#allocation32_spill] sm:$0xff]  ;;  %v2867_v57 = vsub.f32 %v2865_v40, %v2866_v50  ;;  %v3769_v52 = vpop.f32.mrf.mxu0 }
 0x137   :  { %4343 = vmatprep.subr.mxu1 %v7388_v33  ;;  %4317 = vmatpush3.msra.mxu0 %v7424_v14 }
 0x138   :  { %4344 = vmatpush3.msra.mxu1 %v7389_v46  ;;  %4318 = vmatprep.subr.mxu0 %v7425_v18  ;;  %v7440_v46 = vld [vmem:[#allocation34_spill] sm:$0xff]  ;;  %v3838_v26 = vpop.f32.mrf.mxu0 }
 0x139   :  { %4345 = vmatprep.subr.mxu1 %v7390_v9  ;;  %4319 = vmatpush3.msra.mxu0 %v7426_v23  ;;  %v7441_v9 = vld [vmem:[#allocation33_spill] sm:$0xff] }
 0x13a   :  { %4346 = vmatpush3.msra.mxu1 %v7391_v3  ;;  %4320 = vmatprep.subr.mxu0 %v7427_v36  ;;  %v2828_v3 = vsub.f32 %v6674_v13, %v2827_v47  ;;  %v3839_v14 = vpop.f32.mrf.mxu0 }
 0x13b   :  { %4347 = vmatprep.subr.mxu1 %v7392_v60  ;;  %4321 = vmatpush3.msra.mxu0 %v7428_v6  ;;  %v2873_v60 = vand.u32 4294901760, %v2872_v16  ;;  %v3770_v6 = vadd.f32 %v3769_v52, %v3768_v19  ;;  %v3840_v59 = vadd.f32 %v3839_v14, %v3838_v26 }
 0x13c   :  { %4348 = vmatpush3.msra.mxu1 %v7393_v39  ;;  %4322 = vmatprep.subr.mxu0 %v7429_v11  ;;  %v7442_v39 = vld [vmem:[#allocation22_spill] sm:$0xff]  ;;  %v2829_v43 = vand.u32 4294901760, %v2828_v3  ;;  %v3908_v18 = vpop.f32.mrf.mxu0  ;;  %v3734_v11 = vld [vmem:[%s6867_s2] ss:$0 sm:$0xff] }
 0x13d   :  { %4349 = vmatprep.subr.mxu1 %v7394_v15  ;;  %4323 = vmatpush3.msra.mxu0 %v7430_v49  ;;  %v7436_v15 = vld [vmem:[#allocation36_spill] sm:$0xff]  ;;  %v2874_v53 = vsub.f32 %v2872_v16, %v2873_v60 }
 0x13e   :  { %4350 = vmatpush3.msra.mxu1 %v7395_v56  ;;  %4324 = vmatprep.subr.mxu0 %v7431_v35  ;;  %v7437_v33 = vand.u32 4294901760, %v7436_v15  ;;  %v7438_v56 = vld [vmem:[#allocation37_spill] sm:$0xff]  ;;  %v3909_v23 = vpop.f32.mrf.mxu0 }
 0x13f   :  { %4351 = vmatprep.subr.mxu1 %v7432_v12  ;;  %4325 = vmatpush3.msra.mxu0 %v7434_v45  ;;  %v7439_v5 = vand.u32 4294901760, %v7438_v56 }
 0x140   :  { %4352 = vmatpush3.msra.mxu1 %v7435_v48  ;;  %4326 = vmatprep.subr.mxu0 %v7437_v33 }
 0x141   :  { %4353 = vmatprep.subr.mxu1 %v6317_v31  ;;  %4327 = vmatpush3.msra.mxu0 %v7439_v5  ;;  %v4551_v31 = vmov 0.0   ;;  %v3910_v5 = vadd.f32 %v3909_v23, %v3908_v18 }
 0x142   :  { %2647 = vmatprep.mubr.f32.mxu0 %v7440_v46  ;;  %4354 = vmatpush3.msra.mxu1 %v7441_v9 }
 0x143   :  { %2649 = vmatmul.mubr.f32.vlgmr.msra.gmra.mxu0 %v7442_v39  ;;  %4355 = vmatprep.subr.mxu1 %v7396_v34  ;;  %v2868_v34 = vand.u32 4294901760, %v2867_v57 }
 0x144   :  { %4356 = vmatpush3.msra.mxu1 %v7398_v61  ;;  %2751 = vmatprep.mubr.f32.mxu1 %v7440_v46 }
 0x145   :  { %4357 = vmatprep.subr.mxu1 %v7400_v37  ;;  %4414 = vmatprep.subr.mxu0 %v4551_v31  ;;  %v3219_v37 = vld [vmem:[%s6868_s3 + $0x8] sm:$0xff] }
 0x146   :  { %4358 = vmatpush3.msra.mxu1 %v6366_v21  ;;  %4415 = vmatpush3.msra.mxu0 %v6663_v17  ;;  %v2875_v21 = vand.u32 4294901760, %v2874_v53  ;;  %v6776_v41 = vand.u32 4294901760, %v3219_v37 }
 0x147   :  { %4359 = vmatprep.subr.mxu1 %v6390_v29  ;;  %4416 = vmatprep.subr.mxu0 %v4551_v31 }
 0x148   :  { %4360 = vmatpush3.msra.mxu1 %v6420_v22  ;;  %4417 = vmatpush3.msra.mxu0 %v6671_v58  ;;  %v3221_v22 = vld [vmem:[%s6868_s3 + $0x18] sm:$0xff]  ;;  %v6788_v25 = vsub.f32 %v3219_v37, %v6776_v41 }
 0x149   :  { %4361 = vmatprep.subr.mxu1 %v6429_v4  ;;  %4418 = vmatprep.mubr.msk.f32.mxu0 %vm4552_vm1, %v4551_v31  ;;  %v6757_v29 = vand.u32 4294901760, %v3221_v22  ;;  %v3220_v4 = vld [vmem:[%s6868_s3 + $0x10] sm:$0xff] }
 0x14a   :  { %4362 = vmatpush3.msra.mxu1 %v6438_v62  ;;  %4419 = vmatmul.mubr.f32.vlgmr.msra.gmra.mxu0 %v2829_v43  ;;  %v6765_v61 = vand.u32 4294901760, %v3220_v4  ;;  %v3353_v27 = vand.u32 4294901760, %v6788_v25 }
 0x14b   :  { %2753 = vmatmul.mubr.f32.vlgmr.msra.gmra.mxu1 %v7442_v39  ;;  %4421 = vmatprep.subr.mxu1 %v4551_v31  ;;  %v6763_v62 = vsub.f32 %v3221_v22, %v6757_v29 }
 0x14c   :  { %4422 = vmatpush3.msra.mxu1 %v2868_v34  ;;  %4428 = vmatprep.subr.mxu0 %v4551_v31  ;;  %v6774_v10 = vsub.f32 %v3220_v4, %v6765_v61  ;;  %v3354_v51 = vsub.f32 %v6788_v25, %v3353_v27 }
 0x14d   :  { %4423 = vmatprep.subr.mxu1 %v4551_v31  ;;  %4425 = vmatprep.mubr.msk.f32.mxu1 %vm4552_vm1, %v4551_v31  ;;  %v3339_v32 = vand.u32 4294901760, %v6763_v62 }
 0x14e   :  { %4424 = vmatpush3.msra.mxu1 %v2875_v21  ;;  %4429 = vmatpush3.msra.mxu0 %v2865_v40  ;;  %v3346_v20 = vand.u32 4294901760, %v6774_v10  ;;  %v3355_v30 = vand.u32 4294901760, %v3354_v51 }
 0x14f   :  { %4426 = vmatmul.mubr.f32.vlgmr.msra.gmra.mxu1 %v6652_v42  ;;  %4430 = vmatprep.subr.mxu0 %v4551_v31  ;;  %v3340_v8 = vsub.f32 %v6763_v62, %v3339_v32 }
 0x150   :  { %4435 = vmatprep.subr.mxu1 %v4551_v31  ;;  %4431 = vmatpush3.msra.mxu0 %v2872_v16  ;;  %v3347_v7 = vsub.f32 %v6774_v10, %v3346_v20  ;;  %v281_v16 = vadd.f32 %v3770_v6, %v3734_v11 }
 0x151   :  { %4432 = vmatprep.mubr.msk.f32.mxu0 %vm4552_vm1, %v4551_v31  ;;  %4436 = vmatpush3.msra.mxu1 %v6663_v17  ;;  %v3341_v2 = vand.u32 4294901760, %v3340_v8 }
 0x152   :  { %4433 = vmatmul.mubr.f32.vlgmr.msra.gmra.mxu0 %v6674_v13  ;;  %4437 = vmatprep.subr.mxu1 %v4551_v31  ;;  %v3348_v28 = vand.u32 4294901760, %v3347_v7 }
 0x153   :  { %4442 = vmatprep.subr.mxu0 %v4551_v31  ;;  %4438 = vmatpush3.msra.mxu1 %v6671_v58 }
 0x154   :  { %4439 = vmatprep.mubr.msk.f32.mxu1 %vm4552_vm1, %v4551_v31  ;;  %4443 = vmatpush3.msra.mxu0 %v2866_v50 }
 0x155   :  { %4440 = vmatmul.mubr.f32.vlgmr.msra.gmra.mxu1 %v2827_v47  ;;  %4444 = vmatprep.subr.mxu0 %v4551_v31 }
 0x156   :  { %4449 = vmatprep.subr.mxu1 %v4551_v31  ;;  %4445 = vmatpush3.msra.mxu0 %v2873_v60 }
 0x157   :  { %4446 = vmatprep.mubr.msk.f32.mxu0 %vm4552_vm1, %v4551_v31  ;;  %4450 = vmatpush3.msra.mxu1 %v6663_v17 }
 0x158   :  { %4447 = vmatmul.mubr.f32.vlgmr.msra.gmra.mxu0 %v6652_v42  ;;  %4451 = vmatprep.subr.mxu1 %v4551_v31 }
 0x159   :  { %4452 = vmatpush3.msra.mxu1 %v6671_v58  ;;  %4453 = vmatprep.mubr.msk.f32.mxu1 %vm4552_vm1, %v4551_v31  ;;  %v3978_v58 = vpop.f32.mrf.mxu0 }
 0x15a   :  { %4454 = vmatmul.mubr.f32.vlgmr.msra.gmra.mxu1 %v6652_v42  ;;  %4467 = vmatprep.subr.mxu1 %v4551_v31  ;;  %v3804_v42 = vpop.f32.mrf.mxu1 }
 0x15b   :  { %4456 = vmatprep.subr.mxu0 %v4551_v31  ;;  %4475 = vmatprep.mubr.msk.f32.mxu1 %vm4552_vm1, %v4551_v31  ;;  %v3979_v40 = vpop.f32.mrf.mxu0  ;;  %v3805_v47 = vadd.f32 %v3804_v42, %v3803_v0 }
 0x15c   :  { %4464 = vmatprep.mubr.msk.f32.mxu0 %vm4552_vm1, %v4551_v31  ;;  %4457 = vmatpush3.msra.mxu0 %v6757_v29  ;;  %v3873_v24 = vpop.f32.mrf.mxu1  ;;  %v3980_v43 = vadd.f32 %v3979_v40, %v3978_v58 }
 0x15d   :  { %4458 = vmatprep.subr.mxu0 %v4551_v31  ;;  %4468 = vmatpush3.msra.mxu1 %v3341_v2  ;;  %v513_v15 = vadd.f32 %v3805_v47, %v281_v16 }
 0x15e   :  { %4459 = vmatpush3.msra.mxu0 %v6765_v61  ;;  %4469 = vmatprep.subr.mxu1 %v4551_v31  ;;  %v3874_v17 = vpop.f32.mrf.mxu1 }
 0x15f   :  { %4460 = vmatprep.subr.mxu0 %v4551_v31  ;;  %4470 = vmatpush3.msra.mxu1 %v3348_v28  ;;  %v3875_v33 = vadd.f32 %v3874_v17, %v3873_v24  ;;  %v651_v56 = vadd.f32 %v3840_v59, %v513_v15 }
 0x160   :  { %4461 = vmatpush3.msra.mxu0 %v6776_v41  ;;  %4471 = vmatprep.subr.mxu1 %v4551_v31  ;;  %v3943_v36 = vpop.f32.mrf.mxu1 }
 0x161   :  { %4462 = vmatprep.subr.mxu0 %v4551_v31  ;;  %4472 = vmatpush3.msra.mxu1 %v3355_v30  ;;  %v759_v9 = vadd.f32 %v3875_v33, %v651_v56 }
 0x162   :  { %4463 = vmatpush3.msra.mxu0 %v6790_v38  ;;  %4473 = vmatprep.subr.mxu1 %v4551_v31  ;;  %v3944_v13 = vpop.f32.mrf.mxu1 }
 0x163   :  { %4478 = vmatprep.subr.mxu0 %v4551_v31  ;;  %4474 = vmatpush3.msra.mxu1 %v3362_v44  ;;  %v3945_v3 = vadd.f32 %v3944_v13, %v3943_v36  ;;  %v927_v57 = vadd.f32 %v3910_v5, %v759_v9 }
 0x164   :  { %4489 = vmatprep.subr.mxu1 %v4551_v31  ;;  %v4013_v49 = vpop.f32.mrf.mxu1 }
 0x165   :  { %v1031_v34 = vadd.f32 %v3945_v3, %v927_v57 }
 0x166   :  { %v4014_v12 = vpop.f32.mrf.mxu1 }
 0x167   :  { %v4015_v21 = vadd.f32 %v4014_v12, %v4013_v49  ;;  %v1143_v4 = vadd.f32 %v3980_v43, %v1031_v34 }
 0x169   :  { %v1375_v2 = vadd.f32 %v4015_v21, %v1143_v4 }
 0x17a   :  { %v4048_v35 = vpop.f32.mrf.mxu0 }
 0x17c   :  { %v4049_v45 = vpop.f32.mrf.mxu0 }
 0x17d   :  { %v4050_v37 = vadd.f32 %v4049_v45, %v4048_v35 }
 0x17f   :  { %v1513_v51 = vadd.f32 %v4050_v37, %v1375_v2 }
 0x183   :  { %v4083_v48 = vpop.f32.mrf.mxu1 }
 0x185   :  { %v4084_v46 = vpop.f32.mrf.mxu1 }
 0x186   :  { %v4085_v7 = vadd.f32 %v4084_v46, %v4083_v48 }
 0x188   :  { %v1621_v44 = vadd.f32 %v4085_v7, %v1513_v51 }
 0x19c   :  { %v4118_v50 = vpop.f32.mrf.mxu0 }
 0x19e   :  { %v4119_v60 = vpop.f32.mrf.mxu0 }
 0x19f   :  { %v4120_v30 = vadd.f32 %v4119_v60, %v4118_v50 }
 0x1a1   :  { %v1789_v26 = vadd.f32 %v4120_v30, %v1621_v44 }
 0x1a5   :  { %v4153_v39 = vpop.f32.mrf.mxu1 }
 0x1a7   :  { %v4154_v22 = vpop.f32.mrf.mxu1 }
 0x1a8   :  { %v4155_v19 = vadd.f32 %v4154_v22, %v4153_v39 }
 0x1aa   :  { %v1893_v24 = vadd.f32 %v4155_v19, %v1789_v26 }
 0x1be   :  { %v4188_v53 = vpop.f32.mrf.mxu0 }
 0x1c0   :  { %v4189_v1 = vpop.f32.mrf.mxu0 }
 0x1c1   :  { %v4190_v42 = vadd.f32 %v4189_v1, %v4188_v53 }
 0x1c3   :  { %v2005_v23 = vadd.f32 %v4190_v42, %v1893_v24 }
 0x1c9   :  { %v4223_v8 = vpop.f32.mrf.mxu1 }
 0x1cb   :  { %v4224_v55 = vpop.f32.mrf.mxu1 }
 0x1cc   :  { %v4225_v18 = vadd.f32 %v4224_v55, %v4223_v8 }
 0x1ce   :  { %v2237_v13 = vadd.f32 %v4225_v18, %v2005_v23 }
 0x1e1   :  { %v4258_v28 = vpop.f32.mrf.mxu0 }
 0x1e3   :  { %v4259_v52 = vpop.f32.mrf.mxu0 }
 0x1e4   :  { %v4260_v36 = vadd.f32 %v4259_v52, %v4258_v28 }
 0x1e6   :  { %v2375_v11 = vadd.f32 %v4260_v36, %v2237_v13 }
 0x1ea   :  { %v4293_v0 = vpop.f32.mrf.mxu1 }
 0x1ec   :  { %v4294_v17 = vpop.f32.mrf.mxu1 }
 0x1ed   :  { %v4295_v6 = vadd.f32 %v4294_v17, %v4293_v0 }
 0x1ef   :  { %v2483_v16 = vadd.f32 %v4295_v6, %v2375_v11 }
 0x203   :  { %v4328_v14 = vpop.f32.mrf.mxu0 }
 0x205   :  { %v4329_v58 = vpop.f32.mrf.mxu0 }
 0x206   :  { %v4330_v40 = vadd.f32 %v4329_v58, %v4328_v14 }
 0x208   :  { %v2651_v59 = vadd.f32 %v4330_v40, %v2483_v16 }
 0x20a   :  { %v2831_v49 = vpop.f32.mrf.mxu0 }
 0x20b   :  { %v4363_v35 = vpop.f32.mrf.mxu1 }
 0x20c   :  { %v4420_v47 = vpop.f32.mrf.mxu0 }
 0x20d   :  { %v4364_v12 = vpop.f32.mrf.mxu1 }
 0x20e   :  { %v4365_v45 = vadd.f32 %v4364_v12, %v4363_v35 }
 0x20f   :  { %v2912_v48 = vpop.f32.mrf.mxu1 }
 0x210   :  { %v2755_v15 = vadd.f32 %v4365_v45, %v2651_v59 }
 0x211   :  { %v4427_v33 = vpop.f32.mrf.mxu1 }
 0x212   :  { %v2832_v50 = vadd.f32 %v2831_v49, %v2755_v15  ;;  %v2988_v56 = vpop.f32.mrf.mxu0 }
 0x214   :  { %v2913_v5 = vadd.f32 %v2912_v48, %v2832_v50  ;;  %v4434_v46 = vpop.f32.mrf.mxu0 }
 0x215   :  { %v3063_v9 = vpop.f32.mrf.mxu1 }
 0x216   :  { %v2989_v3 = vadd.f32 %v2988_v56, %v2913_v5 }
 0x217   :  { %v4441_v60 = vpop.f32.mrf.mxu1 }
 0x218   :  { %v3064_v39 = vadd.f32 %v3063_v9, %v2989_v3  ;;  %v3140_v57 = vpop.f32.mrf.mxu0 }
 0x21a   :  { %v3141_v43 = vadd.f32 %v3140_v57, %v3064_v39  ;;  %v4448_v53 = vpop.f32.mrf.mxu0  ;;  %v3213_v34 = vpop.f32.mrf.mxu1 }
 0x21c   :  { %v3214_v21 = vadd.f32 %v3213_v34, %v3141_v43  ;;  %v4455_v22 = vpop.f32.mrf.mxu1 }
 0x21e   :  { %v3217_v4 = vmax.f32 %v3214_v21, 0.0 }
 0x220   :  { %v3231_v37 = vsel %vm3229_vm2, %v3217_v4, 0 }
 0x221   :  { %v3302_v1 = vand.u32 4294901760, %v3231_v37 }
 0x223   :  { %v3303_v8 = vsub.f32 %v3231_v37, %v3302_v1  ;;  %4476 = vmatmul.mubr.f32.vlgmr.msra.gmra.mxu1 %v3302_v1 }
 0x224   :  { %4490 = vmatpush3.msra.mxu1 %v6757_v29  ;;  %4497 = vmatprep.mubr.msk.f32.mxu1 %vm4552_vm1, %v4551_v31 }
 0x225   :  { %4491 = vmatprep.subr.mxu1 %v4551_v31  ;;  %v3304_v2 = vand.u32 4294901760, %v3303_v8 }
 0x226   :  { %4492 = vmatpush3.msra.mxu1 %v6765_v61 }
 0x227   :  { %4493 = vmatprep.subr.mxu1 %v4551_v31  ;;  %v3305_v7 = vsub.f32 %v3303_v8, %v3304_v2 }
 0x228   :  { %4494 = vmatpush3.msra.mxu1 %v6776_v41 }
 0x229   :  { %4495 = vmatprep.subr.mxu1 %v4551_v31  ;;  %v3306_v28 = vand.u32 4294901760, %v3305_v7 }
 0x22a   :  { %4496 = vmatpush3.msra.mxu1 %v6790_v38 }
 0x22b   :  { %4498 = vmatmul.mubr.f32.vlgmr.msra.gmra.mxu1 %v3304_v2  ;;  %4511 = vmatprep.subr.mxu1 %v4551_v31 }
 0x22c   :  { %4465 = vmatmul.mubr.f32.vlgmr.msra.gmra.mxu0 %v3306_v28  ;;  %4512 = vmatpush3.msra.mxu1 %v6757_v29 }
 0x22d   :  { %4479 = vmatpush3.msra.mxu0 %v6763_v62  ;;  %4513 = vmatprep.subr.mxu1 %v4551_v31 }
 0x22e   :  { %4480 = vmatprep.subr.mxu0 %v4551_v31  ;;  %4514 = vmatpush3.msra.mxu1 %v6765_v61 }
 0x22f   :  { %4481 = vmatpush3.msra.mxu0 %v6774_v10  ;;  %4515 = vmatprep.subr.mxu1 %v4551_v31  ;;  %v3735_v10 = vld [vmem:[%s6869_s4] ss:$0 sm:$0xff] }
 0x230   :  { %4482 = vmatprep.subr.mxu0 %v4551_v31  ;;  %4516 = vmatpush3.msra.mxu1 %v6776_v41 }
 0x231   :  { %4483 = vmatpush3.msra.mxu0 %v6788_v25  ;;  %4517 = vmatprep.subr.mxu1 %v4551_v31 }
 0x232   :  { %4484 = vmatprep.subr.mxu0 %v4551_v31  ;;  %4486 = vmatprep.mubr.msk.f32.mxu0 %vm4552_vm1, %v4551_v31 }
 0x233   :  { %4485 = vmatpush3.msra.mxu0 %v6799_v54  ;;  %4518 = vmatpush3.msra.mxu1 %v6790_v38 }
 0x234   :  { %4519 = vmatprep.mubr.msk.f32.mxu1 %vm4552_vm1, %v4551_v31  ;;  %4487 = vmatmul.mubr.f32.vlgmr.msra.gmra.mxu0 %v3303_v8 }
 0x235   :  { %4500 = vmatprep.subr.mxu0 %v4551_v31  ;;  %4520 = vmatmul.mubr.f32.vlgmr.msra.gmra.mxu1 %v3302_v1 }
 0x236   :  { %4501 = vmatpush3.msra.mxu0 %v3339_v32  ;;  %4508 = vmatprep.mubr.msk.f32.mxu0 %vm4552_vm1, %v4551_v31 }
 0x237   :  { %4502 = vmatprep.subr.mxu0 %v4551_v31 }
 0x238   :  { %4503 = vmatpush3.msra.mxu0 %v3346_v20 }
 0x239   :  { %4504 = vmatprep.subr.mxu0 %v4551_v31 }
 0x23a   :  { %4505 = vmatpush3.msra.mxu0 %v3353_v27 }
 0x23b   :  { %4506 = vmatprep.subr.mxu0 %v4551_v31 }
 0x23c   :  { %4507 = vmatpush3.msra.mxu0 %v3360_v63 }
 0x23d   :  { %4509 = vmatmul.mubr.f32.vlgmr.msra.gmra.mxu0 %v3302_v1 }
 0x2e3   :  { %v3399_v29 = vpop.f32.mrf.mxu1 }
 0x2e5   :  { %v4477_v62 = vpop.f32.mrf.mxu1 }
 0x2eb   :  { %v3556_v61 = vpop.f32.mrf.mxu1 }
 0x2ec   :  { %v3308_v32 = vpop.f32.mrf.mxu0 }
 0x2ed   :  { %v4499_v41 = vpop.f32.mrf.mxu1  ;;  %v3309_v20 = vadd.f32 %v3735_v10, %v3308_v32 }
 0x2ee   :  { %v4466_v38 = vpop.f32.mrf.mxu0 }
 0x2ef   :  { %v3400_v27 = vadd.f32 %v3399_v29, %v3309_v20 }
 0x2f4   :  { %v3479_v51 = vpop.f32.mrf.mxu0 }
 0x2f5   :  { %v3714_v25 = vpop.f32.mrf.mxu1  ;;  %v3480_v55 = vadd.f32 %v3479_v51, %v3400_v27 }
 0x2f6   :  { %v4488_v30 = vpop.f32.mrf.mxu0 }
 0x2f7   :  { %v4521_v31 = vpop.f32.mrf.mxu1  ;;  %v3557_v54 = vadd.f32 %v3556_v61, %v3480_v55 }
 0x2fd   :  { %v3639_v63 = vpop.f32.mrf.mxu0 }
 0x2fe   :  { %v3640_v44 = vadd.f32 %v3639_v63, %v3557_v54 }
 0x2ff   :  { %v4510_v19 = vpop.f32.mrf.mxu0 }
 0x300   :  { %v3715_v52 = vadd.f32 %v3714_v25, %v3640_v44 }
 0x302   :  { %3719 = vst.msk [vmem:[#allocation2] sm:$0x3] %vm3718_vm3, %v3715_v52 }
 0x303   :  { %4539 = shalt.err (!%p4536_p4)
}
 0x304   :  { %3729 = dma.vmem_to_hbm [thread:$0]  %s3727_s26, 32, %s6870_s5, [#allocation3]  }
 0x305   :  { %4548 = dma.done.wait [#allocation3], 32  }
 0x306   :  { %4549 = vsyncadd [#allocation3], 4294967264 }
 0x307   :  { %3733 = vsyncpa [#allocation3], 1 }

</bundles_post_ra>
